<compile_context>
chip_gen: v7x
topology: tpu7x:2x2x1
jax: 0.10.0
libtpu: 0.0.40
codegen_flags: <defaults>
</compile_context>

<pallas_src>
import functools

import jax
import jax.numpy as jnp
from jax.experimental import pallas as pl
from jax.experimental.pallas import tpu as pltpu


LANE = 128     # feature dims padded to a multiple of the lane width
SUBLANE = 8    # batch tiles padded to a multiple of the sublane count


def _round_up(n, m):
    return ((n + m - 1) // m) * m


def _leaky_relu(x, slope=0.2):
    return jnp.where(x > 0, x, slope * x)


def _default_bf16_acts():
    """bf16 elementwise path on v6e/v7x (packed bf16 VPU); f32 on v5e."""
    try:
        kind = jax.devices()[0].device_kind.lower()
    except Exception:
        return True
    if "v5 lite" in kind or "v5e" in kind or "v5litepod" in kind:
        return False
    return True


# --------------------------------------------------------------------------
# Kernel
# --------------------------------------------------------------------------
def vae_kernel(x_ref, eps_ref,
               ew1_ref, eb1_ref, ew2_ref, eb2_ref, ewmv_ref, ebmv_ref,
               dw1_ref, db1_ref, dw2_ref, db2_ref, dw3_ref, db3_ref,
               xhat_ref, mv_ref, *, acts_bf16):
    """One batch tile of the fused VAE forward: encoder -> reparam -> decoder."""
    f32 = jnp.float32
    bf16 = jnp.bfloat16
    act_dt = bf16 if acts_bf16 else f32

    def dense(a_bf16, w_ref, b_ref):
        # MXU matmul, f32 accumulate, f32 bias add.
        return jnp.dot(a_bf16, w_ref[...], preferred_element_type=f32) + b_ref[...]

    def act(y):
        # bias-add result (f32) -> LeakyReLU in act_dt -> bf16 for the next dot.
        return _leaky_relu(y.astype(act_dt)).astype(bf16)

    x = x_ref[...]                                   # (bt, Dp) bf16 (pre-cast)

    # ---------------- Encoder ----------------
    h = act(dense(x, ew1_ref, eb1_ref))
    h = act(dense(h, ew2_ref, eb2_ref))

    # Fused mean | log_var head: one matmul, one wide lane-dense store.
    mv = dense(h, ewmv_ref, ebmv_ref)                # (bt, 2*Lp) f32
    mv_ref[...] = mv.astype(mv_ref.dtype)

    Lp = eps_ref.shape[-1]
    mean = mv[:, :Lp]
    log_var = mv[:, Lp:]

    # ------------- Reparameterization -------------
    # z = mean + exp(0.5 * log_var) * eps   (exp on the EUP, all f32)
    z = mean + jnp.exp(0.5 * log_var) * eps_ref[...]

    # ---------------- Decoder ----------------
    d = act(dense(z.astype(bf16), dw1_ref, db1_ref))
    d = act(dense(d, dw2_ref, db2_ref))
    o = dense(d, dw3_ref, db3_ref)
    xhat_ref[...] = jax.nn.sigmoid(o).astype(xhat_ref.dtype)


# --------------------------------------------------------------------------
# One-time parameter preparation (hoisted out of the forward pass)
# --------------------------------------------------------------------------
def _pad2(a, rows, cols, dtype):
    r, c = a.shape
    return jnp.pad(a, ((0, rows - r), (0, cols - c))).astype(dtype)


def prepare_params(params):
    """Zero-pad every dim to a multiple of 128, cast weights to bf16 and fuse
    the mean/var heads into one (Hp, 2*Lp) matrix.  Biases stay f32.

    Call ONCE (at init / checkpoint-load time); pass the result into
    vae_forward so no per-call HBM pass over the parameters happens."""
    (ew1, eb1, ew2, eb2, ewm, ebm, ewv, ebv,
     dw1, db1, dw2, db2, dw3, db3) = params

    D_in, H = ew1.shape
    L = ewm.shape[1]
    D_out = dw3.shape[1]
    Dp = _round_up(D_in, LANE)
    Hp = _round_up(H, LANE)
    Lp = _round_up(L, LANE)
    Op = _round_up(D_out, LANE)

    bf16, f32 = jnp.bfloat16, jnp.float32
    ew1p = _pad2(ew1, Dp, Hp, bf16)
    eb1p = _pad2(eb1, 1, Hp, f32)
    ew2p = _pad2(ew2, Hp, Hp, bf16)
    eb2p = _pad2(eb2, 1, Hp, f32)
    ewmvp = jnp.concatenate([_pad2(ewm, Hp, Lp, bf16), _pad2(ewv, Hp, Lp, bf16)], axis=1)
    ebmvp = jnp.concatenate([_pad2(ebm, 1, Lp, f32), _pad2(ebv, 1, Lp, f32)], axis=1)
    dw1p = _pad2(dw1, Lp, Hp, bf16)
    db1p = _pad2(db1, 1, Hp, f32)
    dw2p = _pad2(dw2, Hp, Hp, bf16)
    db2p = _pad2(db2, 1, Hp, f32)
    dw3p = _pad2(dw3, Hp, Op, bf16)
    db3p = _pad2(db3, 1, Op, f32)

    padded = (ew1p, eb1p, ew2p, eb2p, ewmvp, ebmvp,
              dw1p, db1p, dw2p, db2p, dw3p, db3p)
    padded = jax.tree_util.tree_map(jax.device_put, padded)  # materialize once
    dims = (D_in, H, L, D_out, Dp, Hp, Lp, Op)
    return padded, dims


def _vmem_limit_bytes(bt, Dp, Hp, Lp, Op):
    """Scoped-VMEM budget: double-buffered streaming blocks + single-buffered
    weights + headroom for f32 intermediates / compiler temporaries."""
    BF16, F32 = 2, 4
    stream = 2 * (bt * Dp * BF16          # x tile (bf16)
                  + bt * Lp * F32         # eps tile
                  + bt * Op * F32         # x_hat tile
                  + bt * 2 * Lp * F32)    # mean|log_var tile
    weights = BF16 * (Dp * Hp + 2 * Hp * Hp + Hp * 2 * Lp + Lp * Hp + Hp * Op)
    biases = F32 * (4 * Hp + 2 * Lp + Op)
    interm = 6 * bt * max(Hp, 2 * Lp, Op) * F32
    total = stream + weights + biases + interm
    return int(min(max(2 * total, 16 * 1024 * 1024), 64 * 1024 * 1024))


# --------------------------------------------------------------------------
# Forward wrapper
# --------------------------------------------------------------------------
def vae_forward(x, eps, padded_params, dims, *, batch_tile=256, acts_bf16=None):
    """Model.forward: returns (x_hat, mean, log_var).

    padded_params/dims come from prepare_params() (call once, reuse).
    batch_tile: max rows of x per grid step; the actual tile is balanced
    against the real batch and forced to >=2 grid iterations when possible so
    the "parallel" axis shards across both v7x TensorCores."""
    if acts_bf16 is None:
        acts_bf16 = _default_bf16_acts()

    D_in, H, L, D_out, Dp, Hp, Lp, Op = dims
    B = x.shape[0]

    # ---- batch tiling: balanced tiles, >=2 iterations when the batch allows.
    n_tiles = max(int(pl.cdiv(B, batch_tile)), 1)
    if B >= 2 * SUBLANE:
        n_tiles = max(n_tiles, 2)
    bt = _round_up(int(pl.cdiv(B, n_tiles)), SUBLANE)
    B_pad = bt * n_tiles
    grid = (n_tiles,)

    # ---- pad + cast inputs once in the wrapper (x in bf16, eps stays f32).
    xp = jnp.pad(x.astype(jnp.bfloat16), ((0, B_pad - B), (0, Dp - D_in)))
    epsp = jnp.pad(eps.astype(jnp.float32), ((0, B_pad - B), (0, Lp - L)))

    def const_spec(shape):
        # Constant weight/bias block: same tile every grid step -> single-buffer.
        return pl.BlockSpec(shape, lambda i: (0, 0), pipeline_mode=pl.Buffered(1))

    in_specs = [
        pl.BlockSpec((bt, Dp), lambda i: (i, 0)),            # x (bf16)
        pl.BlockSpec((bt, Lp), lambda i: (i, 0)),            # eps (f32)
        const_spec((Dp, Hp)), const_spec((1, Hp)),           # enc FC_input
        const_spec((Hp, Hp)), const_spec((1, Hp)),           # enc FC_input2
        const_spec((Hp, 2 * Lp)), const_spec((1, 2 * Lp)),   # fused mean|var head
        const_spec((Lp, Hp)), const_spec((1, Hp)),           # dec FC_hidden
        const_spec((Hp, Hp)), const_spec((1, Hp)),           # dec FC_hidden2
        const_spec((Hp, Op)), const_spec((1, Op)),           # dec FC_output
    ]
    out_specs = [
        pl.BlockSpec((bt, Op), lambda i: (i, 0)),            # x_hat (padded)
        pl.BlockSpec((bt, 2 * Lp), lambda i: (i, 0)),        # mean | log_var (padded)
    ]
    out_shape = [
        jax.ShapeDtypeStruct((B_pad, Op), jnp.float32),
        jax.ShapeDtypeStruct((B_pad, 2 * Lp), jnp.float32),
    ]

    kernel = functools.partial(vae_kernel, acts_bf16=acts_bf16)

    x_hat_p, mv_p = pl.pallas_call(
        kernel,
        grid=grid,
        in_specs=in_specs,
        out_specs=out_specs,
        out_shape=out_shape,
        compiler_params=pltpu.CompilerParams(
            dimension_semantics=("parallel",),
            vmem_limit_bytes=_vmem_limit_bytes(bt, Dp, Hp, Lp, Op)),
    )(xp, epsp, *padded_params)

    x_hat = x_hat_p[:B, :D_out]
    mean = mv_p[:B, :L]
    log_var = mv_p[:B, Lp:Lp + L]
    return x_hat, mean, log_var


# --------------------------------------------------------------------------
# Parameter init + plain-JAX reference (mirrors the kernel's numerics)
# --------------------------------------------------------------------------
def init_params(key, input_dim, hidden_dim, latent_dim, output_dim):
    """PyTorch-default-like Linear init (uniform +/- 1/sqrt(fan_in)),
    weights stored as (in, out), biases as (1, out), all f32."""
    def linear(k, fan_in, fan_out):
        kw, kb = jax.random.split(k)
        bound = 1.0 / jnp.sqrt(fan_in)
        w = jax.random.uniform(kw, (fan_in, fan_out), jnp.float32, -bound, bound)
        b = jax.random.uniform(kb, (1, fan_out), jnp.float32, -bound, bound)
        return w, b

    ks = jax.random.split(key, 7)
    ew1, eb1 = linear(ks[0], input_dim, hidden_dim)     # Encoder.FC_input
    ew2, eb2 = linear(ks[1], hidden_dim, hidden_dim)    # Encoder.FC_input2
    ewm, ebm = linear(ks[2], hidden_dim, latent_dim)    # Encoder.FC_mean
    ewv, ebv = linear(ks[3], hidden_dim, latent_dim)    # Encoder.FC_var
    dw1, db1 = linear(ks[4], latent_dim, hidden_dim)    # Decoder.FC_hidden
    dw2, db2 = linear(ks[5], hidden_dim, hidden_dim)    # Decoder.FC_hidden2
    dw3, db3 = linear(ks[6], hidden_dim, output_dim)    # Decoder.FC_output
    return (ew1, eb1, ew2, eb2, ewm, ebm, ewv, ebv,
            dw1, db1, dw2, db2, dw3, db3)


def vae_reference(x, eps, params, *, acts_bf16=True):
    """Plain-JAX reference mirroring the kernel's bf16-in / f32-accumulate dots
    and its activation dtype."""
    (ew1, eb1, ew2, eb2, ewm, ebm, ewv, ebv,
     dw1, db1, dw2, db2, dw3, db3) = params
    bf16, f32 = jnp.bfloat16, jnp.float32
    act_dt = bf16 if acts_bf16 else f32

    def dense(a, w, b):
        return jnp.dot(a.astype(bf16), w.astype(bf16),
                       preferred_element_type=f32) + b

    def act(y):
        return _leaky_relu(y.astype(act_dt))

    h = act(dense(x, ew1, eb1))
    h = act(dense(h, ew2, eb2))
    mean = dense(h, ewm, ebm)
    log_var = dense(h, ewv, ebv)
    z = mean + jnp.exp(0.5 * log_var) * eps
    d = act(dense(z, dw1, db1))
    d = act(dense(d, dw2, db2))
    x_hat = jax.nn.sigmoid(dense(d, dw3, db3))
    return x_hat, mean, log_var


if __name__ == "__main__":
    # Small shapes consistent with the module: x is (batch, input_dim).
    batch, input_dim, hidden_dim, latent_dim = 64, 32, 64, 16
    output_dim = input_dim

    key = jax.random.PRNGKey(0)
    kx, ke, kp = jax.random.split(key, 3)
    x = jax.random.normal(kx, (batch, input_dim), jnp.float32)
    # epsilon for the reparameterization trick (torch.randn_like equivalent),
    # generated host-side so the kernel is deterministic and verifiable.
    eps = jax.random.normal(ke, (batch, latent_dim), jnp.float32)
    params = init_params(kp, input_dim, hidden_dim, latent_dim, output_dim)

    # One-time weight padding / bf16 cast / mean|var head fusion.
    padded, dims = prepare_params(params)

    acts_bf16 = _default_bf16_acts()
    # Default batch_tile=256; the wrapper balances it to 2 x 32-row tiles here
    # (>=2 grid iterations for v7x megacore, no batch-pad waste).
    x_hat, mean, log_var = vae_forward(x, eps, padded, dims,
                                       batch_tile=256, acts_bf16=acts_bf16)
    jax.block_until_ready((x_hat, mean, log_var))

    x_hat_ref, mean_ref, log_var_ref = vae_reference(x, eps, params,
                                                     acts_bf16=acts_bf16)
    assert jnp.allclose(mean, mean_ref, atol=1e-2, rtol=1e-2)
    assert jnp.allclose(log_var, log_var_ref, atol=1e-2, rtol=1e-2)
    assert jnp.allclose(x_hat, x_hat_ref, atol=1e-2, rtol=1e-2)

    print("KERNEL_OK")
</pallas_src>

<mosaic_0001>
module attributes {stable_mosaic.version = 11 : i64} {
  func.func @vae_kernel(%arg0: i32, %arg1: memref<32x128xbf16, #tpu.memory_space<vmem>>, %arg2: memref<32x128xf32, #tpu.memory_space<vmem>>, %arg3: memref<128x128xbf16, #tpu.memory_space<vmem>>, %arg4: memref<1x128xf32, #tpu.memory_space<vmem>>, %arg5: memref<128x128xbf16, #tpu.memory_space<vmem>>, %arg6: memref<1x128xf32, #tpu.memory_space<vmem>>, %arg7: memref<128x256xbf16, #tpu.memory_space<vmem>>, %arg8: memref<1x256xf32, #tpu.memory_space<vmem>>, %arg9: memref<128x128xbf16, #tpu.memory_space<vmem>>, %arg10: memref<1x128xf32, #tpu.memory_space<vmem>>, %arg11: memref<128x128xbf16, #tpu.memory_space<vmem>>, %arg12: memref<1x128xf32, #tpu.memory_space<vmem>>, %arg13: memref<128x128xbf16, #tpu.memory_space<vmem>>, %arg14: memref<1x128xf32, #tpu.memory_space<vmem>>, %arg15: memref<32x128xf32, #tpu.memory_space<vmem>>, %arg16: memref<32x256xf32, #tpu.memory_space<vmem>>) attributes {dimension_semantics = [#tpu.dimension_semantics<parallel>], iteration_bounds = array<i64: 2>, scalar_prefetch = 0 : i64, scratch_operands = 0 : i64, tpu.core_type = #tpu.core_type<tc>, window_params = [{transform_indices = @transform_0, window_bounds = array<i64: 32, 128>}, {transform_indices = @transform_1, window_bounds = array<i64: 32, 128>}, {pipeline_mode = #tpu.pipeline_mode<synchronous>, transform_indices = @transform_2, window_bounds = array<i64: 128, 128>}, {pipeline_mode = #tpu.pipeline_mode<synchronous>, transform_indices = @transform_3, window_bounds = array<i64: 1, 128>}, {pipeline_mode = #tpu.pipeline_mode<synchronous>, transform_indices = @transform_4, window_bounds = array<i64: 128, 128>}, {pipeline_mode = #tpu.pipeline_mode<synchronous>, transform_indices = @transform_5, window_bounds = array<i64: 1, 128>}, {pipeline_mode = #tpu.pipeline_mode<synchronous>, transform_indices = @transform_6, window_bounds = array<i64: 128, 256>}, {pipeline_mode = #tpu.pipeline_mode<synchronous>, transform_indices = @transform_7, window_bounds = array<i64: 1, 256>}, {pipeline_mode = #tpu.pipeline_mode<synchronous>, transform_indices = @transform_8, window_bounds = array<i64: 128, 128>}, {pipeline_mode = #tpu.pipeline_mode<synchronous>, transform_indices = @transform_9, window_bounds = array<i64: 1, 128>}, {pipeline_mode = #tpu.pipeline_mode<synchronous>, transform_indices = @transform_10, window_bounds = array<i64: 128, 128>}, {pipeline_mode = #tpu.pipeline_mode<synchronous>, transform_indices = @transform_11, window_bounds = array<i64: 1, 128>}, {pipeline_mode = #tpu.pipeline_mode<synchronous>, transform_indices = @transform_12, window_bounds = array<i64: 128, 128>}, {pipeline_mode = #tpu.pipeline_mode<synchronous>, transform_indices = @transform_13, window_bounds = array<i64: 1, 128>}, {transform_indices = @transform_14, window_bounds = array<i64: 32, 128>}, {transform_indices = @transform_15, window_bounds = array<i64: 32, 256>}]} {
    %c0 = arith.constant 0 : index
    %c0_0 = arith.constant 0 : index
    %0 = vector.load %arg1[%c0, %c0_0] : memref<32x128xbf16, #tpu.memory_space<vmem>>, vector<32x128xbf16>
    %c0_1 = arith.constant 0 : index
    %c0_2 = arith.constant 0 : index
    %1 = vector.load %arg3[%c0_1, %c0_2] : memref<128x128xbf16, #tpu.memory_space<vmem>>, vector<128x128xbf16>
    %cst = arith.constant dense<0.000000e+00> : vector<32x128xf32>
    %2 = tpu.matmul %0, %1, %cst {dimension_numbers = #tpu.dot_dimension_numbers<[1], [0], [0], [1], [0, 0, 1, 1], [], []>} : vector<32x128xbf16>, vector<128x128xbf16>, vector<32x128xf32> -> vector<32x128xf32>
    %c0_3 = arith.constant 0 : index
    %c0_4 = arith.constant 0 : index
    %3 = vector.load %arg4[%c0_3, %c0_4] : memref<1x128xf32, #tpu.memory_space<vmem>>, vector<1x128xf32>
    %4 = vector.broadcast %3 : vector<1x128xf32> to vector<32x128xf32>
    %5 = arith.addf %2, %4 : vector<32x128xf32>
    %6 = arith.truncf %5 : vector<32x128xf32> to vector<32x128xbf16>
    %cst_5 = arith.constant 0.000000e+00 : bf16
    %7 = vector.broadcast %cst_5 : bf16 to vector<32x128xbf16>
    %8 = arith.cmpf ogt, %6, %7 : vector<32x128xbf16>
    %cst_6 = arith.constant 2.001950e-01 : bf16
    %9 = vector.broadcast %cst_6 : bf16 to vector<32x128xbf16>
    %10 = arith.mulf %9, %6 : vector<32x128xbf16>
    %11 = arith.select %8, %6, %10 : vector<32x128xi1>, vector<32x128xbf16>
    %c0_7 = arith.constant 0 : index
    %c0_8 = arith.constant 0 : index
    %12 = vector.load %arg5[%c0_7, %c0_8] : memref<128x128xbf16, #tpu.memory_space<vmem>>, vector<128x128xbf16>
    %cst_9 = arith.constant dense<0.000000e+00> : vector<32x128xf32>
    %13 = tpu.matmul %11, %12, %cst_9 {dimension_numbers = #tpu.dot_dimension_numbers<[1], [0], [0], [1], [0, 0, 1, 1], [], []>} : vector<32x128xbf16>, vector<128x128xbf16>, vector<32x128xf32> -> vector<32x128xf32>
    %c0_10 = arith.constant 0 : index
    %c0_11 = arith.constant 0 : index
    %14 = vector.load %arg6[%c0_10, %c0_11] : memref<1x128xf32, #tpu.memory_space<vmem>>, vector<1x128xf32>
    %15 = vector.broadcast %14 : vector<1x128xf32> to vector<32x128xf32>
    %16 = arith.addf %13, %15 : vector<32x128xf32>
    %17 = arith.truncf %16 : vector<32x128xf32> to vector<32x128xbf16>
    %cst_12 = arith.constant 0.000000e+00 : bf16
    %18 = vector.broadcast %cst_12 : bf16 to vector<32x128xbf16>
    %19 = arith.cmpf ogt, %17, %18 : vector<32x128xbf16>
    %cst_13 = arith.constant 2.001950e-01 : bf16
    %20 = vector.broadcast %cst_13 : bf16 to vector<32x128xbf16>
    %21 = arith.mulf %20, %17 : vector<32x128xbf16>
    %22 = arith.select %19, %17, %21 : vector<32x128xi1>, vector<32x128xbf16>
    %c0_14 = arith.constant 0 : index
    %c0_15 = arith.constant 0 : index
    %23 = vector.load %arg7[%c0_14, %c0_15] : memref<128x256xbf16, #tpu.memory_space<vmem>>, vector<128x256xbf16>
    %cst_16 = arith.constant dense<0.000000e+00> : vector<32x256xf32>
    %24 = tpu.matmul %22, %23, %cst_16 {dimension_numbers = #tpu.dot_dimension_numbers<[1], [0], [0], [1], [0, 0, 1, 1], [], []>} : vector<32x128xbf16>, vector<128x256xbf16>, vector<32x256xf32> -> vector<32x256xf32>
    %c0_17 = arith.constant 0 : index
    %c0_18 = arith.constant 0 : index
    %25 = vector.load %arg8[%c0_17, %c0_18] : memref<1x256xf32, #tpu.memory_space<vmem>>, vector<1x256xf32>
    %26 = vector.broadcast %25 : vector<1x256xf32> to vector<32x256xf32>
    %27 = arith.addf %24, %26 : vector<32x256xf32>
    %c0_19 = arith.constant 0 : index
    %c0_20 = arith.constant 0 : index
    %28 = vector.load %arg16[%c0_19, %c0_20] : memref<32x256xf32, #tpu.memory_space<vmem>>, vector<32x256xf32>
    tpu.vector_store %arg16[%c0_19, %c0_20], %27 {strides = array<i32>} : memref<32x256xf32, #tpu.memory_space<vmem>>, vector<32x256xf32>,
    %29 = vector.extract_strided_slice %27 {offsets = [0, 0], sizes = [32, 128], strides = [1, 1]} : vector<32x256xf32> to vector<32x128xf32>
    %30 = vector.extract_strided_slice %27 {offsets = [0, 128], sizes = [32, 128], strides = [1, 1]} : vector<32x256xf32> to vector<32x128xf32>
    %cst_21 = arith.constant 5.000000e-01 : f32
    %31 = vector.broadcast %cst_21 : f32 to vector<32x128xf32>
    %32 = arith.mulf %31, %30 : vector<32x128xf32>
    %33 = math.exp %32 : vector<32x128xf32>
    %c0_22 = arith.constant 0 : index
    %c0_23 = arith.constant 0 : index
    %34 = vector.load %arg2[%c0_22, %c0_23] : memref<32x128xf32, #tpu.memory_space<vmem>>, vector<32x128xf32>
    %35 = arith.mulf %33, %34 : vector<32x128xf32>
    %36 = arith.addf %29, %35 : vector<32x128xf32>
    %37 = arith.truncf %36 : vector<32x128xf32> to vector<32x128xbf16>
    %c0_24 = arith.constant 0 : index
    %c0_25 = arith.constant 0 : index
    %38 = vector.load %arg9[%c0_24, %c0_25] : memref<128x128xbf16, #tpu.memory_space<vmem>>, vector<128x128xbf16>
    %cst_26 = arith.constant dense<0.000000e+00> : vector<32x128xf32>
    %39 = tpu.matmul %37, %38, %cst_26 {dimension_numbers = #tpu.dot_dimension_numbers<[1], [0], [0], [1], [0, 0, 1, 1], [], []>} : vector<32x128xbf16>, vector<128x128xbf16>, vector<32x128xf32> -> vector<32x128xf32>
    %c0_27 = arith.constant 0 : index
    %c0_28 = arith.constant 0 : index
    %40 = vector.load %arg10[%c0_27, %c0_28] : memref<1x128xf32, #tpu.memory_space<vmem>>, vector<1x128xf32>
    %41 = vector.broadcast %40 : vector<1x128xf32> to vector<32x128xf32>
    %42 = arith.addf %39, %41 : vector<32x128xf32>
    %43 = arith.truncf %42 : vector<32x128xf32> to vector<32x128xbf16>
    %cst_29 = arith.constant 0.000000e+00 : bf16
    %44 = vector.broadcast %cst_29 : bf16 to vector<32x128xbf16>
    %45 = arith.cmpf ogt, %43, %44 : vector<32x128xbf16>
    %cst_30 = arith.constant 2.001950e-01 : bf16
    %46 = vector.broadcast %cst_30 : bf16 to vector<32x128xbf16>
    %47 = arith.mulf %46, %43 : vector<32x128xbf16>
    %48 = arith.select %45, %43, %47 : vector<32x128xi1>, vector<32x128xbf16>
    %c0_31 = arith.constant 0 : index
    %c0_32 = arith.constant 0 : index
    %49 = vector.load %arg11[%c0_31, %c0_32] : memref<128x128xbf16, #tpu.memory_space<vmem>>, vector<128x128xbf16>
    %cst_33 = arith.constant dense<0.000000e+00> : vector<32x128xf32>
    %50 = tpu.matmul %48, %49, %cst_33 {dimension_numbers = #tpu.dot_dimension_numbers<[1], [0], [0], [1], [0, 0, 1, 1], [], []>} : vector<32x128xbf16>, vector<128x128xbf16>, vector<32x128xf32> -> vector<32x128xf32>
    %c0_34 = arith.constant 0 : index
    %c0_35 = arith.constant 0 : index
    %51 = vector.load %arg12[%c0_34, %c0_35] : memref<1x128xf32, #tpu.memory_space<vmem>>, vector<1x128xf32>
    %52 = vector.broadcast %51 : vector<1x128xf32> to vector<32x128xf32>
    %53 = arith.addf %50, %52 : vector<32x128xf32>
    %54 = arith.truncf %53 : vector<32x128xf32> to vector<32x128xbf16>
    %cst_36 = arith.constant 0.000000e+00 : bf16
    %55 = vector.broadcast %cst_36 : bf16 to vector<32x128xbf16>
    %56 = arith.cmpf ogt, %54, %55 : vector<32x128xbf16>
    %cst_37 = arith.constant 2.001950e-01 : bf16
    %57 = vector.broadcast %cst_37 : bf16 to vector<32x128xbf16>
    %58 = arith.mulf %57, %54 : vector<32x128xbf16>
    %59 = arith.select %56, %54, %58 : vector<32x128xi1>, vector<32x128xbf16>
    %c0_38 = arith.constant 0 : index
    %c0_39 = arith.constant 0 : index
    %60 = vector.load %arg13[%c0_38, %c0_39] : memref<128x128xbf16, #tpu.memory_space<vmem>>, vector<128x128xbf16>
    %cst_40 = arith.constant dense<0.000000e+00> : vector<32x128xf32>
    %61 = tpu.matmul %59, %60, %cst_40 {dimension_numbers = #tpu.dot_dimension_numbers<[1], [0], [0], [1], [0, 0, 1, 1], [], []>} : vector<32x128xbf16>, vector<128x128xbf16>, vector<32x128xf32> -> vector<32x128xf32>
    %c0_41 = arith.constant 0 : index
    %c0_42 = arith.constant 0 : index
    %62 = vector.load %arg14[%c0_41, %c0_42] : memref<1x128xf32, #tpu.memory_space<vmem>>, vector<1x128xf32>
    %63 = vector.broadcast %62 : vector<1x128xf32> to vector<32x128xf32>
    %64 = arith.addf %61, %63 : vector<32x128xf32>
    %65 = arith.negf %64 : vector<32x128xf32>
    %66 = math.exp %65 : vector<32x128xf32>
    %cst_43 = arith.constant 1.000000e+00 : f32
    %67 = vector.broadcast %cst_43 : f32 to vector<32x128xf32>
    %68 = arith.addf %67, %66 : vector<32x128xf32>
    %69 = arith.divf %67, %68 : vector<32x128xf32>
    %c0_44 = arith.constant 0 : index
    %c0_45 = arith.constant 0 : index
    %70 = vector.load %arg15[%c0_44, %c0_45] : memref<32x128xf32, #tpu.memory_space<vmem>>, vector<32x128xf32>
    tpu.vector_store %arg15[%c0_44, %c0_45], %69 {strides = array<i32>} : memref<32x128xf32, #tpu.memory_space<vmem>>, vector<32x128xf32>,
    return
  }
  func.func @transform_0(%arg0: i32) -> (i32, i32) {
    %c0_i32 = arith.constant 0 : i32
    %c0_i32_0 = arith.constant 0 : i32
    return %arg0, %c0_i32 : i32, i32
  }
  func.func @transform_1(%arg0: i32) -> (i32, i32) {
    %c0_i32 = arith.constant 0 : i32
    %c0_i32_0 = arith.constant 0 : i32
    return %arg0, %c0_i32 : i32, i32
  }
  func.func @transform_2(%arg0: i32) -> (i32, i32) {
    %c0_i32 = arith.constant 0 : i32
    %c0_i32_0 = arith.constant 0 : i32
    %c0_i32_1 = arith.constant 0 : i32
    return %c0_i32, %c0_i32_0 : i32, i32
  }
  func.func @transform_3(%arg0: i32) -> (i32, i32) {
    %c0_i32 = arith.constant 0 : i32
    %c0_i32_0 = arith.constant 0 : i32
    %c0_i32_1 = arith.constant 0 : i32
    return %c0_i32, %c0_i32_0 : i32, i32
  }
  func.func @transform_4(%arg0: i32) -> (i32, i32) {
    %c0_i32 = arith.constant 0 : i32
    %c0_i32_0 = arith.constant 0 : i32
    %c0_i32_1 = arith.constant 0 : i32
    return %c0_i32, %c0_i32_0 : i32, i32
  }
  func.func @transform_5(%arg0: i32) -> (i32, i32) {
    %c0_i32 = arith.constant 0 : i32
    %c0_i32_0 = arith.constant 0 : i32
    %c0_i32_1 = arith.constant 0 : i32
    return %c0_i32, %c0_i32_0 : i32, i32
  }
  func.func @transform_6(%arg0: i32) -> (i32, i32) {
    %c0_i32 = arith.constant 0 : i32
    %c0_i32_0 = arith.constant 0 : i32
    %c0_i32_1 = arith.constant 0 : i32
    return %c0_i32, %c0_i32_0 : i32, i32
  }
  func.func @transform_7(%arg0: i32) -> (i32, i32) {
    %c0_i32 = arith.constant 0 : i32
    %c0_i32_0 = arith.constant 0 : i32
    %c0_i32_1 = arith.constant 0 : i32
    return %c0_i32, %c0_i32_0 : i32, i32
  }
  func.func @transform_8(%arg0: i32) -> (i32, i32) {
    %c0_i32 = arith.constant 0 : i32
    %c0_i32_0 = arith.constant 0 : i32
    %c0_i32_1 = arith.constant 0 : i32
    return %c0_i32, %c0_i32_0 : i32, i32
  }
  func.func @transform_9(%arg0: i32) -> (i32, i32) {
    %c0_i32 = arith.constant 0 : i32
    %c0_i32_0 = arith.constant 0 : i32
    %c0_i32_1 = arith.constant 0 : i32
    return %c0_i32, %c0_i32_0 : i32, i32
  }
  func.func @transform_10(%arg0: i32) -> (i32, i32) {
    %c0_i32 = arith.constant 0 : i32
    %c0_i32_0 = arith.constant 0 : i32
    %c0_i32_1 = arith.constant 0 : i32
    return %c0_i32, %c0_i32_0 : i32, i32
  }
  func.func @transform_11(%arg0: i32) -> (i32, i32) {
    %c0_i32 = arith.constant 0 : i32
    %c0_i32_0 = arith.constant 0 : i32
    %c0_i32_1 = arith.constant 0 : i32
    return %c0_i32, %c0_i32_0 : i32, i32
  }
  func.func @transform_12(%arg0: i32) -> (i32, i32) {
    %c0_i32 = arith.constant 0 : i32
    %c0_i32_0 = arith.constant 0 : i32
    %c0_i32_1 = arith.constant 0 : i32
    return %c0_i32, %c0_i32_0 : i32, i32
  }
  func.func @transform_13(%arg0: i32) -> (i32, i32) {
    %c0_i32 = arith.constant 0 : i32
    %c0_i32_0 = arith.constant 0 : i32
    %c0_i32_1 = arith.constant 0 : i32
    return %c0_i32, %c0_i32_0 : i32, i32
  }
  func.func @transform_14(%arg0: i32) -> (i32, i32) {
    %c0_i32 = arith.constant 0 : i32
    %c0_i32_0 = arith.constant 0 : i32
    return %arg0, %c0_i32 : i32, i32
  }
  func.func @transform_15(%arg0: i32) -> (i32, i32) {
    %c0_i32 = arith.constant 0 : i32
    %c0_i32_0 = arith.constant 0 : i32
    return %arg0, %c0_i32 : i32, i32
  }
}

</mosaic_0001>

<bundles_post_ra>
// kernel: tpu_custom_call.1
= control target key start
LH: loop header
LB: loop body
LE: loop exit
PB: predicated region body
PF: predicated region fallthrough
CT: control target
= control target key end

     0   :  { %s3154_s0 = inlined_call_operand.hbm [shape: bf16[64,128], index: 0, kind: input, shape index: {}]   ;;  %s3155_s1 = inlined_call_operand.hbm [shape: f32[64,128], index: 1, kind: input, shape index: {}]   ;;  %s3156_s2 = inlined_call_operand.hbm [shape: bf16[128,128], index: 2, kind: input, shape index: {}]   ;;  %s3157_s3 = inlined_call_operand.vmem [shape: f32[1,128], index: 3, kind: input, shape index: {}]   ;;  %s3158_s4 = inlined_call_operand.hbm [shape: bf16[128,128], index: 4, kind: input, shape index: {}]   ;;  %s3159_s5 = inlined_call_operand.vmem [shape: f32[1,128], index: 5, kind: input, shape index: {}]   ;;  %s3160_s6 = inlined_call_operand.hbm [shape: bf16[128,256], index: 6, kind: input, shape index: {}]   ;;  %s3161_s7 = inlined_call_operand.vmem [shape: f32[1,256], index: 7, kind: input, shape index: {}]   ;;  %s3162_s8 = inlined_call_operand.hbm [shape: bf16[128,128], index: 8, kind: input, shape index: {}]   ;;  %s3163_s9 = inlined_call_operand.vmem [shape: f32[1,128], index: 9, kind: input, shape index: {}]   ;;  %s3164_s10 = inlined_call_operand.hbm [shape: bf16[128,128], index: 10, kind: input, shape index: {}]   ;;  %s3165_s11 = inlined_call_operand.vmem [shape: f32[1,128], index: 11, kind: input, shape index: {}]   ;;  %s3166_s12 = inlined_call_operand.hbm [shape: bf16[128,128], index: 12, kind: input, shape index: {}]   ;;  %s3167_s13 = inlined_call_operand.vmem [shape: f32[1,128], index: 13, kind: input, shape index: {}]   ;;  %s3168_s14 = inlined_call_operand.hbm [shape: f32[64,128], index: 14, kind: output, shape index: {0}]   ;;  %s3169_s15 = inlined_call_operand.hbm [shape: f32[64,256], index: 15, kind: output, shape index: {1}]  }
   0x1   :  { %3181 = sst [smem:[#allocation27_spill]] %s3154_s0 }
   0x2   :  { %3182 = sst [smem:[#allocation28_spill]] %s3156_s2 }
   0x3   :  { %3183 = sst [smem:[#allocation29_spill]] %s3158_s4 }
   0x4   :  { %3184 = sst [smem:[#allocation30_spill]] %s3159_s5 }
   0x5   :  { %3185 = sst [smem:[#allocation31_spill]] %s3160_s6 }
   0x6   :  { %3186 = sst [smem:[#allocation32_spill]] %s3161_s7 }
   0x7   :  { %3187 = sst [smem:[#allocation33_spill]] %s3162_s8 }
   0x8   :  { %3188 = sst [smem:[#allocation34_spill]] %s3163_s9 }
   0x9   :  { %3189 = sst [smem:[#allocation35_spill]] %s3164_s10 }
   0xa   :  { %3190 = sst [smem:[#allocation36_spill]] %s3165_s11 }
   0xb   :  { %3191 = sst [smem:[#allocation37_spill]] %s3167_s13 }
   0xc   :  { %3192 = sst [smem:[#allocation38_spill]] %s3168_s14 }
   0xd   :  { %3193 = sst [smem:[#allocation39_spill]] %s3169_s15 }
   0xe   :  { %21 = vsyncpa [#allocation3], 0 }
   0xf   :  { %23 = vsyncpa [#allocation3 + $0x1], 0 }
  0x10   :  { %24 = vsyncpa [#allocation6], 0 }
  0x11   :  { %26 = vsyncpa [#allocation6 + $0x1], 0 }
  0x12   :  { %27 = vsyncpa [#allocation9], 0 }
  0x13   :  { %28 = vsyncpa [#allocation12], 0 }
  0x14   :  { %29 = vsyncpa [#allocation15], 0 }
  0x15   :  { %30 = vsyncpa [#allocation4], 0 }
  0x16   :  { %32 = vsyncpa [#allocation4 + $0x1], 0 }
  0x17   :  { %33 = vsyncpa [#allocation18], 0 }
  0x18   :  { %35 = vsyncpa [#allocation18 + $0x1], 0  ;;  %s2669_s18 = smov 0   ;;  %s2671_s19 = smov 0  }
  0x19   :  { %s2673_s20 = smov 0   ;;  %s2675_s21 = smov 0  }
  0x1a LB: > { %s2570_s22 = smov [#allocation7]   ;;  %s2690_s24 = sadd.s32 4294967295, %s2568_s21   ;;  %s2568_s21 = sphi %s2675_s21, %s3236_s21   ;;  %s2564_s20 = sphi %s2673_s20, %s3235_s20   ;;  %s2560_s19 = sphi %s2671_s19, %s3234_s19   ;;  %s2556_s18 = sphi %s2669_s18, %s3233_s18  }
  0x1b   : > { %s414_s23 = sshll.u32 %s2570_s22, 4  ;;  %p1750_p0 = scmp.ge.s32.totalorder %s2568_s21, 1  ;;  %s2695_s23 = int_to_ptr.vmem [resolvable:$true] %s414_s23 }
  0x1c   : > { %p3172_p1 = scmp.eq.s32.totalorder %s2690_s24, 0  ;;  %p402_p2 = scmp.lt.s32.totalorder %s2568_s21, 3 }
  0x1d   : > { %s2571_s26 = smov [#allocation8]   ;;  %s2572_s29 = smov [#allocation11]  }
  0x1e   : > { %p2697_p3 = pnand %p1750_p0, %p402_p2  ;;  %s430_s27 = sshll.u32 %s2571_s26, 4  ;;  %s2710_s27 = int_to_ptr.vmem [resolvable:$true] %s430_s27 }
  0x1f   : > { %s462_s30 = sshll.u32 %s2572_s29, 4  ;;  %s3196_s2 = sld [smem:[#allocation28_spill]]  ;;  %s2712_s30 = int_to_ptr.vmem [resolvable:$true] %s462_s30 }
  0x20   : > { %s3194_s25 = scalar_select %p2697_p3, 1, 0 }
  0x21   : > { %p2038_p5 = pneg %p2697_p3 }
  0x23   : > { %p2706_p6 = pnand %p2038_p5, %p3172_p1 }
  0x25   : > { %s2222_s22 = scalar_lea.hbm %s3196_s2, 1024  ;;  %p2722_p8 = pneg %p2706_p6 }
  0x26   : > { %p2223_p7 = scmp.ne.s32.totalorder %s3196_s2, %s2222_s22  ;;  %p2229_p11 = scmp.lt.u32.totalorder %s2222_s22, %s3196_s2 }
  0x28   : > { %p2225_p9 = pnand %p2722_p8, %p2223_p7 }
  0x2a   : > { %p2226_p10 = pneg %p2225_p9 }
  0x2c   : > { %p2231_p12 = pnand %p2229_p11, %p2226_p10 }
  0x2e   : > { %2234 = shalt.err (!%p2231_p12)
}
  0x2f   : > { %s2235_s13 = scalar_lea.vmem %s2695_s23, 1024  ;;  %p2243_p5 = scmp.lt.s32.totalorder %s2695_s23, %s2695_s23 }
  0x30   : > { %p2236_p13 = scmp.ne.s32.totalorder %s2695_s23, %s2235_s13  ;;  %p2244_p4 = scmp.lt.s32.totalorder %s2235_s13, %s2235_s13 }
  0x32   : > { %p2238_p0 = pnand %p2236_p13, %p2722_p8  ;;  %p2245_p7 = por %p2244_p4, %p2243_p5 }
  0x34   : > { %p2239_p2 = pneg %p2238_p0 }
  0x36   : > { %p2246_p9 = pnand %p2245_p7, %p2239_p2 }
  0x38   : > { %2249 = shalt.err (!%p2246_p9)
}
  0x39   : > { %s3174_s14 = smov 64   ;;  %s3176_s15 = smov 4  }
  0x3a   : > { %2041 = dma.hbm_to_vmem [thread:$0]  (!%p2706_p6), %s3196_s2, 1024, %s2695_s23, [#allocation6], %s3174_s14, %s3174_s14, %s3176_s15  }
  0x3b   : > { %s3198_s4 = sld [smem:[#allocation29_spill]] }
  0x41   : > { %s2250_s13 = scalar_lea.hbm %s3198_s4, 1024 }
  0x42   : > { %p2251_p4 = scmp.ne.s32.totalorder %s3198_s4, %s2250_s13  ;;  %p2257_p12 = scmp.lt.u32.totalorder %s2250_s13, %s3198_s4 }
  0x44   : > { %p2253_p10 = pnand %p2251_p4, %p2722_p8 }
  0x46   : > { %p2254_p11 = pneg %p2253_p10 }
  0x48   : > { %p2259_p13 = pnand %p2257_p12, %p2254_p11 }
  0x4a   : > { %2262 = shalt.err (!%p2259_p13)
}
  0x4b   : > { %s2263_s23 = scalar_lea.vmem %s2710_s27, 1024  ;;  %p2271_p7 = scmp.lt.s32.totalorder %s2710_s27, %s2710_s27 }
  0x4c   : > { %p2264_p0 = scmp.ne.s32.totalorder %s2710_s27, %s2263_s23  ;;  %p2272_p9 = scmp.lt.s32.totalorder %s2263_s23, %s2263_s23 }
  0x4e   : > { %p2266_p2 = pnand %p2264_p0, %p2722_p8  ;;  %p2273_p4 = por %p2272_p9, %p2271_p7 }
  0x50   : > { %p2267_p5 = pneg %p2266_p2 }
  0x52   : > { %p2274_p10 = pnand %p2273_p4, %p2267_p5 }
  0x54   : > { %2277 = shalt.err (!%p2274_p10)
}
  0x55   : > { %2044 = dma.hbm_to_vmem [thread:$0]  (!%p2706_p6), %s3198_s4, 1024, %s2710_s27, [#allocation9], %s3174_s14, %s3174_s14, %s3176_s15  }
  0x56   : > { %s3199_s8 = sld [smem:[#allocation33_spill]] }
  0x5c   : > { %s2278_s16 = scalar_lea.hbm %s3199_s8, 1024 }
  0x5d   : > { %p2279_p11 = scmp.ne.s32.totalorder %s3199_s8, %s2278_s16  ;;  %p2285_p0 = scmp.lt.u32.totalorder %s2278_s16, %s3199_s8 }
  0x5f   : > { %p2281_p12 = pnand %p2279_p11, %p2722_p8 }
  0x61   : > { %p2282_p13 = pneg %p2281_p12 }
  0x63   : > { %p2287_p2 = pnand %p2285_p0, %p2282_p13 }
  0x65   : > { %2290 = shalt.err (!%p2287_p2)
}
  0x66   : > { %s2291_s27 = scalar_lea.vmem %s2712_s30, 1024  ;;  %p2299_p4 = scmp.lt.s32.totalorder %s2712_s30, %s2712_s30 }
  0x67   : > { %p2292_p5 = scmp.ne.s32.totalorder %s2712_s30, %s2291_s27  ;;  %p2300_p10 = scmp.lt.s32.totalorder %s2291_s27, %s2291_s27 }
  0x69   : > { %p2294_p7 = pnand %p2292_p5, %p2722_p8  ;;  %p2301_p11 = por %p2300_p10, %p2299_p4 }
  0x6b   : > { %p2295_p9 = pneg %p2294_p7 }
  0x6d   : > { %p2302_p12 = pnand %p2301_p11, %p2295_p9 }
  0x6f   : > { %2305 = shalt.err (!%p2302_p12)
}
  0x70   : > { %2050 = dma.hbm_to_vmem [thread:$0]  (!%p2706_p6), %s3199_s8, 1024, %s2712_s30, [#allocation12], %s3174_s14, %s3174_s14, %s3176_s15  }
  0x71   : > { %s2575_s7 = smov [#allocation10]   ;;  %s3200_s6 = sld [smem:[#allocation31_spill]] }
  0x72   : > { %s446_s9 = sshll.u32 %s2575_s7, 4  ;;  %s447_s9 = int_to_ptr.vmem [resolvable:$true] %s446_s9 }
  0x77   : > { %s2306_s17 = scalar_lea.hbm %s3200_s6, 2048 }
  0x78   : > { %p2307_p13 = scmp.ne.s32.totalorder %s3200_s6, %s2306_s17  ;;  %p2313_p5 = scmp.lt.u32.totalorder %s2306_s17, %s3200_s6 }
  0x7a   : > { %p2309_p0 = pnand %p2307_p13, %p2722_p8 }
  0x7c   : > { %p2310_p2 = pneg %p2309_p0 }
  0x7e   : > { %p2315_p7 = pnand %p2313_p5, %p2310_p2 }
  0x80   : > { %2318 = shalt.err (!%p2315_p7)
}
  0x81   : > { %s2319_s30 = scalar_lea.vmem %s447_s9, 2048  ;;  %p2327_p11 = scmp.lt.s32.totalorder %s447_s9, %s447_s9 }
  0x82   : > { %p2320_p9 = scmp.ne.s32.totalorder %s447_s9, %s2319_s30  ;;  %p2328_p12 = scmp.lt.s32.totalorder %s2319_s30, %s2319_s30 }
  0x84   : > { %p2322_p4 = pnand %p2320_p9, %p2722_p8  ;;  %p2329_p1 = por %p2328_p12, %p2327_p11 }
  0x86   : > { %p2323_p10 = pneg %p2322_p4 }
  0x88   : > { %p2330_p3 = pnand %p2329_p1, %p2323_p10 }
  0x8a   : > { %2333 = shalt.err (!%p2330_p3)
}
  0x8b   : > { %s3178_s23 = smov 128   ;;  %s3179_s5 = smov 8  }
  0x8c   : > { %2047 = dma.hbm_to_vmem [thread:$0]  (!%p2706_p6), %s3200_s6, 2048, %s447_s9, [#allocation9], %s3178_s23, %s3178_s23, %s3179_s5  }
  0x8d   : > { %s2578_s16 = smov [#allocation13]   ;;  %s2579_s22 = smov [#allocation14]  }
  0x8e   : > { %s478_s17 = sshll.u32 %s2578_s16, 4  ;;  %s494_s29 = sshll.u32 %s2579_s22, 4  ;;  %s479_s17 = int_to_ptr.vmem [resolvable:$true] %s478_s17  ;;  %s2819_s29 = int_to_ptr.vmem [resolvable:$true] %s494_s29 }
  0x8f   : > { %s3201_s10 = sld [smem:[#allocation35_spill]] }
  0x95   : > { %s2334_s30 = scalar_lea.hbm %s3201_s10, 1024 }
  0x96   : > { %p2335_p1 = scmp.ne.s32.totalorder %s3201_s10, %s2334_s30  ;;  %p2341_p0 = scmp.lt.u32.totalorder %s2334_s30, %s3201_s10 }
  0x98   : > { %p2337_p3 = pnand %p2335_p1, %p2722_p8 }
  0x9a   : > { %p2338_p13 = pneg %p2337_p3 }
  0x9c   : > { %p2343_p2 = pnand %p2341_p0, %p2338_p13 }
  0x9e   : > { %2346 = shalt.err (!%p2343_p2)
}
  0x9f   : > { %s2347_s11 = scalar_lea.vmem %s479_s17, 1024  ;;  %p2355_p4 = scmp.lt.s32.totalorder %s479_s17, %s479_s17 }
  0xa0   : > { %p2348_p5 = scmp.ne.s32.totalorder %s479_s17, %s2347_s11  ;;  %p2356_p10 = scmp.lt.s32.totalorder %s2347_s11, %s2347_s11 }
  0xa2   : > { %p2350_p7 = pnand %p2348_p5, %p2722_p8  ;;  %p2357_p11 = por %p2356_p10, %p2355_p4 }
  0xa4   : > { %p2351_p9 = pneg %p2350_p7 }
  0xa6   : > { %p2358_p12 = pnand %p2357_p11, %p2351_p9 }
  0xa8   : > { %2361 = shalt.err (!%p2358_p12)
}
  0xa9   : > { %s3202_s14 = smov 4   ;;  %s3203_s15 = smov 64  }
  0xaa   : > { %2053 = dma.hbm_to_vmem [thread:$0]  (!%p2706_p6), %s3201_s10, 1024, %s479_s17, [#allocation12], %s3203_s15, %s3203_s15, %s3202_s14  }
  0xab   : > { %s2362_s30 = scalar_lea.hbm %s3166_s12, 1024 }
  0xac   : > { %p2363_p1 = scmp.ne.s32.totalorder %s3166_s12, %s2362_s30  ;;  %p2369_p0 = scmp.lt.u32.totalorder %s2362_s30, %s3166_s12 }
  0xae   : > { %p2365_p3 = pnand %p2363_p1, %p2722_p8 }
  0xb0   : > { %p2366_p13 = pneg %p2365_p3 }
  0xb2   : > { %p2371_p2 = pnand %p2369_p0, %p2366_p13 }
  0xb4   : > { %2374 = shalt.err (!%p2371_p2)
}
  0xb5   : > { %s2375_s17 = scalar_lea.vmem %s2819_s29, 1024  ;;  %p2383_p4 = scmp.lt.s32.totalorder %s2819_s29, %s2819_s29 }
  0xb6   : > { %p2376_p5 = scmp.ne.s32.totalorder %s2819_s29, %s2375_s17  ;;  %p2384_p10 = scmp.lt.s32.totalorder %s2375_s17, %s2375_s17 }
  0xb8   : > { %p2378_p7 = pnand %p2376_p5, %p2722_p8  ;;  %p2385_p11 = por %p2384_p10, %p2383_p4 }
  0xba   : > { %p2379_p9 = pneg %p2378_p7 }
  0xbc   : > { %p2386_p12 = pnand %p2385_p11, %p2379_p9 }
  0xbe   : > { %2389 = shalt.err (!%p2386_p12)
}
  0xbf   : > { %2056 = dma.hbm_to_vmem [thread:$0]  (!%p2706_p6), %s3166_s12, 1024, %s2819_s29, [#allocation15], %s3203_s15, %s3203_s15, %s3202_s14  }
  0xc0   : > { %s1749_s28 = sadd.s32 4294967294, %s2568_s21   ;;  %s2870_s26 = sadd.s32 1, %s2568_s21  }
  0xc1   : > { %s45_s22 = ssub.s32 %s2568_s21, %s2870_s26  ;;  %s48_s13 = sadd.s32 1, %s2564_s20 }
  0xc2   : > { %p46_p8 = scmp.eq.s32.totalorder %s45_s22, 0  ;;  %p55_p1 = scmp.ne.s32.totalorder %s2564_s20, %s2560_s19 }
  0xc3   : > { %p56_p3 = scmp.eq.s32.totalorder %s2568_s21, 0  ;;  %p61_p13 = scmp.ne.s32.totalorder %s2560_s19, %s2556_s18 }
  0xc4   : > { %s2881_s27 = scalar_select %p46_p8, %s2564_s20, %s48_s13  }
  0xc5   : > { %p2883_p0 = por %p56_p3, %p55_p1  ;;  %p3205_p2 = scmp.eq.s32.totalorder %s2690_s24, 0 }
  0xc6   : > { %p363_p5 = scmp.eq.s32.totalorder %s2690_s24, 1  ;;  %p369_p7 = scmp.eq.s32.totalorder %s1749_s28, 1 }
  0xc7   : > { %p2889_p6 = por %p3205_p2, %p61_p13  ;;  %p2077_p9 = scmp.lt.s32.totalorder %s2568_s21, 2 }
  0xc8   : > { %s2896_s7 = sand.u32 1, %s2564_s20   ;;  %p2898_p4 = por %p363_p5, %p55_p1 }
  0xc9   : > { %p2902_p10 = por %p369_p7, %p61_p13  ;;  %s1758_s17 = sshll.u32 %s2896_s7, 4 }
  0xca   : > { %s3207_s9 = scalar_select %p2898_p4, 1, 0 }
  0xcb   : > { %s3208_s11 = scalar_select %p2902_p10, 1, 0 }
  0xcc   : > { %s1851_s23 = sshll.u32 %s2568_s21, 8  ;;  %s3209_s0 = sld [smem:[#allocation27_spill]] }
  0xcd   : > { %s515_s13 = scalar_lea.vmem [#allocation2], %s1758_s17  ;;  %p2917_p11 = pnand %p2077_p9, %p2883_p0 }
  0xce   : > { %s522_s5 = sshll.u32 %s515_s13, 4  ;;  %s1761_s6 = sshll.u32 %s2896_s7, 5  ;;  %s2913_s5 = int_to_ptr.vmem [resolvable:$true] %s522_s5 }
  0xcf   : > { %s512_s16 = scalar_lea.sflag [#allocation3], %s2896_s7  ;;  %p2392_p8 = pneg %p2917_p11 }
  0xd2   : > { %s2911_s28 = scalar_lea.hbm %s3209_s0, %s1851_s23  ;;  %s2395_s30 = scalar_lea.hbm %s3209_s0, 512 }
  0xd3   : > { %s2390_s23 = scalar_lea.hbm %s2911_s28, 256  ;;  %p2396_p13 = scmp.lt.u32.totalorder %s2911_s28, %s3209_s0 }
  0xd4   : > { %p2391_p12 = scmp.ne.s32.totalorder %s2911_s28, %s2390_s23  ;;  %p2397_p0 = scmp.lt.u32.totalorder %s2395_s30, %s2390_s23 }
  0xd5   : > { %p2399_p5 = scmp.lt.u32.totalorder %s2390_s23, %s2911_s28 }
  0xd6   : > { %p2393_p1 = pnand %p2392_p8, %p2391_p12  ;;  %p2398_p2 = por %p2397_p0, %p2396_p13 }
  0xd8   : > { %p2394_p3 = pneg %p2393_p1  ;;  %p2400_p7 = por %p2399_p5, %p2398_p2 }
  0xda   : > { %p2401_p9 = pnand %p2400_p7, %p2394_p3 }
  0xdc   : > { %2404 = shalt.err (!%p2401_p9)
}
  0xdd   : > { %s2405_s4 = scalar_lea.vmem %s2913_s5, 256  ;;  %s2580_s17 = smov [#allocation2]  }
  0xde   : > { %p2406_p12 = scmp.ne.s32.totalorder %s2913_s5, %s2405_s4  ;;  %s2410_s22 = sshll.u32 %s2580_s17, 4  ;;  %s2411_s22 = int_to_ptr.vmem [resolvable:$false] %s2410_s22 }
  0xdf   : > { %s2412_s8 = scalar_lea.vmem %s2411_s22, 512  ;;  %p2413_p4 = scmp.lt.s32.totalorder %s2913_s5, %s2411_s22 }
  0xe0   : > { %p2408_p1 = pnand %p2406_p12, %p2392_p8  ;;  %p2414_p13 = scmp.lt.s32.totalorder %s2412_s8, %s2405_s4 }
  0xe2   : > { %p2409_p10 = pneg %p2408_p1  ;;  %p2415_p0 = por %p2414_p13, %p2413_p4 }
  0xe4   : > { %p2416_p2 = pnand %p2415_p0, %p2409_p10 }
  0xe6   : > { %2419 = shalt.err (!%p2416_p2)
}
  0xe7   : > { %2060 = dma.hbm_to_vmem [thread:$0]  (!%p2917_p11), %s2911_s28, 256, %s2913_s5, %s512_s16, %s3203_s15, %s3203_s15, %s3202_s14  }
  0xe8   : > { %s1852_s23 = sshll.u32 %s2568_s21, 9  ;;  %s536_s17 = scalar_lea.vmem [#allocation5], %s1761_s6 }
  0xe9   : > { %s2958_s13 = scalar_lea.hbm %s3155_s1, %s1852_s23  ;;  %s543_s22 = sshll.u32 %s536_s17, 4  ;;  %s2962_s22 = int_to_ptr.vmem [resolvable:$true] %s543_s22 }
  0xea   : > { %s3211_s8 = sand.u32 1, %s2568_s21   ;;  %s2420_s10 = scalar_lea.hbm %s2958_s13, 512 }
  0xeb   : > { %s2966_s0 = scalar_lea.sflag [#allocation6], %s3211_s8  ;;  %p2421_p4 = scmp.ne.s32.totalorder %s2958_s13, %s2420_s10 }
  0xec   : > { %s2425_s15 = scalar_lea.hbm %s3155_s1, 1024  ;;  %p2426_p5 = scmp.lt.u32.totalorder %s2958_s13, %s3155_s1 }
  0xed   : > { %p2423_p10 = pnand %p2421_p4, %p2392_p8  ;;  %p2427_p7 = scmp.lt.u32.totalorder %s2425_s15, %s2420_s10 }
  0xee   : > { %p2429_p12 = scmp.lt.u32.totalorder %s2420_s10, %s2958_s13 }
  0xef   : > { %p2424_p3 = pneg %p2423_p10  ;;  %p2428_p9 = por %p2427_p7, %p2426_p5 }
  0xf1   : > { %p2430_p1 = por %p2429_p12, %p2428_p9 }
  0xf3   : > { %p2431_p13 = pnand %p2430_p1, %p2424_p3 }
  0xf5   : > { %2434 = shalt.err (!%p2431_p13)
}
  0xf6   : > { %s2435_s6 = scalar_lea.vmem %s2962_s22, 512  ;;  %s2581_s16 = smov [#allocation5]  }
  0xf7   : > { %p2436_p0 = scmp.ne.s32.totalorder %s2962_s22, %s2435_s6  ;;  %s2440_s23 = sshll.u32 %s2581_s16, 4  ;;  %s2441_s23 = int_to_ptr.vmem [resolvable:$false] %s2440_s23 }
  0xf8   : > { %s2442_s30 = scalar_lea.vmem %s2441_s23, 1024  ;;  %p2443_p10 = scmp.lt.s32.totalorder %s2962_s22, %s2441_s23 }
  0xf9   : > { %p2438_p2 = pnand %p2436_p0, %p2392_p8  ;;  %p2444_p5 = scmp.lt.s32.totalorder %s2442_s30, %s2435_s6 }
  0xfb   : > { %p2439_p4 = pneg %p2438_p2  ;;  %p2445_p7 = por %p2444_p5, %p2443_p10 }
  0xfd   : > { %p2446_p9 = pnand %p2445_p7, %p2439_p4 }
  0xff   : > { %2449 = shalt.err (!%p2446_p9)
}
 0x100   : > { %s3212_s10 = smov 8   ;;  %s3213_s4 = smov 128  }
 0x101   : > { %2063 = dma.hbm_to_vmem [thread:$0]  (!%p2917_p11), %s2958_s13, 512, %s2962_s22, %s2966_s0, %s3213_s4, %s3213_s4, %s3212_s10  }
 0x102   : > { %p3214_p8 = scmp.ne.s32.totalorder %s3194_s25, 0 }
 0x103   : > { %s2998_s17 = sand.u32 (!%p3214_p8), 1, %s2560_s19  }
 0x104   : > { %555 = sbr.rel (%p3214_p8) target bundleno = 1712 (0x6b0), region = 76  ;;  %s1765_s8 = sshll.u32 (!%p3214_p8), %s2998_s17, 4 }
 0x105   : > { %s558_s5 = scalar_lea.sflag (!%p3214_p8), [#allocation3], %s2998_s17  ;;  %s3002_s14 = scalar_lea.vmem (!%p3214_p8), [#allocation2], %s1765_s8 }
 0x10b   : > { %2523 = dma.done.wait (%p2889_p6), %s558_s5, 256  }
 0x10c   : > { %2525 = vsyncadd (%p2889_p6), %s558_s5, 4294967040  ;;  %s566_s0 = sand.u32 1, %s2690_s24   ;;  %s1766_s2 = sshll.u32 %s2998_s17, 5 }
 0x10d   : > { %s567_s25 = scalar_lea.sflag [#allocation6], %s566_s0  ;;  %s3012_s13 = scalar_lea.vmem [#allocation5], %s1766_s2 }
 0x10e   : > { %2527 = dma.done.wait (%p2889_p6), %s567_s25, 512  }
 0x10f   : > { %2529 = vsyncadd (%p2889_p6), %s567_s25, 4294966784  ;;  %p3215_p11 = scmp.eq.s32.totalorder %s2690_s24, 0 }
 0x111   : > { %2531 = dma.done.wait (%p3215_p11), [#allocation6], 1024   ;;  %p3216_p3 = pmov %p3215_p11 }
 0x113   : > { %2533 = vsyncadd (%p3216_p3), [#allocation6], 4294966272  ;;  %p3217_p12 = pmov %p3216_p3 }
 0x114   : > { %p3218_p1 = pmov %p3216_p3 }
 0x115   : > { %2535 = dma.done.wait (%p3217_p12), [#allocation9], 3072  }
 0x116   : > { %2537 = vsyncadd (%p3218_p1), [#allocation9], 4294964224  ;;  %p3219_p13 = pmov %p3218_p1 }
 0x117   : > { %p3220_p0 = pmov %p3218_p1 }
 0x118   : > { %2539 = dma.done.wait (%p3219_p13), [#allocation12], 2048  }
 0x119   : > { %2541 = vsyncadd (%p3220_p0), [#allocation12], 4294965248  ;;  %p3221_p6 = pmov %p3220_p0 }
 0x11a   : > { %p3222_p2 = pmov %p3220_p0 }
 0x11b   : > { %2543 = dma.done.wait (%p3221_p6), [#allocation15], 1024  }
 0x11c   : > { %2545 = vsyncadd (%p3222_p2), [#allocation15], 4294966272  ;;  %v2132_v0 = vld [vmem:[#allocation7] sm:$0xff]   ;;  %v2133_v1 = vld [vmem:[#allocation7 + $0x8] sm:$0xff]   ;;  %v2582_v49 = vmov 0   ;;  %s3223_s28 = sld [smem:[#allocation30_spill]] }
 0x11d   : > { %1906 = vmatprep.subr.bf16.mxu0 %v2132_v0  ;;  %v2134_v2 = vld [vmem:[#allocation7 + $0x10] sm:$0xff]   ;;  %v2135_v3 = vld [vmem:[#allocation7 + $0x18] sm:$0xff]   ;;  %v2142_v5 = vld [vmem:[#allocation8] sm:$0xff]   ;;  %s3224_s23 = sld [smem:[#allocation32_spill]]  ;;  %s1774_s30 = sshll.u32 %s2998_s17, 6 }
 0x11e   : > { %1907 = vmatpush3.bf16.msra.mxu0 %v2132_v0  ;;  %v2140_v4 = vld [vmem:[%s3002_s14] sm:$0xff]   ;;  %v2143_v6 = vld [vmem:[#allocation8 + $0x8] sm:$0xff]   ;;  %1926 = vmatprep.subr.bf16.mxu1 %v2142_v5  ;;  %v2145_v10 = vld [vmem:[#allocation8 + $0x18] sm:$0xff]   ;;  %s3046_s10 = scalar_lea.vmem [#allocation17], %s1774_s30  ;;  %s3225_s5 = sld [smem:[#allocation34_spill]] }
 0x11f   : > { %1908 = vmatprep.subr.bf16.mxu0 %v2133_v1  ;;  %1922 = vmatprep.mubr.bf16.mxu0 %v2140_v4  ;;  %v2136_v7 = vld [vmem:[#allocation7 + $0x20] sm:$0xff]   ;;  %v2137_v8 = vld [vmem:[#allocation7 + $0x28] sm:$0xff]   ;;  %v2144_v9 = vld [vmem:[#allocation8 + $0x10] sm:$0xff]   ;;  %s3226_s25 = sld [smem:[#allocation36_spill]]  ;;  %s1855_s29 = sshll.u32 %s2690_s24, 10 }
 0x120   : > { %1927 = vmatpush3.bf16.msra.mxu1 %v2142_v5  ;;  %v2138_v11 = vld [vmem:[#allocation7 + $0x30] sm:$0xff]   ;;  %v2146_v12 = vld [vmem:[#allocation8 + $0x20] sm:$0xff]   ;;  %v2139_v13 = vld [vmem:[#allocation7 + $0x38] sm:$0xff]   ;;  %s3227_s7 = sld [smem:[#allocation39_spill]]  ;;  %s1534_s6 = scalar_lea.sflag [#allocation18], %s2998_s17 }
 0x121   : > { %1928 = vmatprep.subr.bf16.mxu1 %v2143_v6  ;;  %v2141_v14 = vld [vmem:[%s3002_s14 + $0x8] sm:$0xff]   ;;  %v2148_v16 = vld [vmem:[#allocation8 + $0x30] sm:$0xff]   ;;  %v1775_v31 = vld [vmem:[%s3157_s3] ss:$0 sm:$0xff]  ;;  %p3228_p10 = scmp.ne.s32.totalorder %s3207_s9, 0 }
 0x122   : > { %1909 = vmatpush3.bf16.msra.mxu0 %v2133_v1  ;;  %v2147_v15 = vld [vmem:[#allocation8 + $0x28] sm:$0xff]   ;;  %v2149_v17 = vld [vmem:[#allocation8 + $0x38] sm:$0xff]   ;;  %v1786_v51 = vld [vmem:[%s3223_s28] ss:$0 sm:$0xff] }
 0x123   : > { %1910 = vmatprep.subr.bf16.mxu0 %v2134_v2  ;;  %v2150_v18 = vld [vmem:[#allocation10] ss:$8 sps:$4 sm:$0xff]   ;;  %v2152_v19 = vld [vmem:[#allocation10 + $0x4] ss:$8 sps:$4 sm:$0xff]   ;;  %v2155_v20 = vld [vmem:[#allocation10 + $0x14] ss:$8 sps:$4 sm:$0xff]  }
 0x124   : > { %1929 = vmatpush3.bf16.msra.mxu1 %v2143_v6  ;;  %v2153_v21 = vld [vmem:[#allocation10 + $0x10] ss:$8 sps:$4 sm:$0xff]   ;;  %v2158_v22 = vld [vmem:[#allocation10 + $0x24] ss:$8 sps:$4 sm:$0xff]   ;;  %v2156_v23 = vld [vmem:[#allocation10 + $0x20] ss:$8 sps:$4 sm:$0xff]  }
 0x125   : > { %1930 = vmatprep.subr.bf16.mxu1 %v2144_v9  ;;  %v2161_v24 = vld [vmem:[#allocation10 + $0x34] ss:$8 sps:$4 sm:$0xff]   ;;  %v2159_v25 = vld [vmem:[#allocation10 + $0x30] ss:$8 sps:$4 sm:$0xff]   ;;  %v2164_v26 = vld [vmem:[#allocation10 + $0x44] ss:$8 sps:$4 sm:$0xff]  }
 0x126   : > { %1911 = vmatpush3.bf16.msra.mxu0 %v2134_v2  ;;  %v2162_v27 = vld [vmem:[#allocation10 + $0x40] ss:$8 sps:$4 sm:$0xff]   ;;  %v2167_v28 = vld [vmem:[#allocation10 + $0x54] ss:$8 sps:$4 sm:$0xff]   ;;  %v2165_v29 = vld [vmem:[#allocation10 + $0x50] ss:$8 sps:$4 sm:$0xff]   ;;  %s3073_s28 = scalar_lea.hbm %s3227_s7, %s1855_s29 }
 0x127   : > { %1912 = vmatprep.subr.bf16.mxu0 %v2135_v3  ;;  %v2170_v45 = vld [vmem:[#allocation10 + $0x64] ss:$8 sps:$4 sm:$0xff]   ;;  %v2168_v46 = vld [vmem:[#allocation10 + $0x60] ss:$8 sps:$4 sm:$0xff]   ;;  %v2173_v47 = vld [vmem:[#allocation10 + $0x74] ss:$8 sps:$4 sm:$0xff]  }
 0x128   : > { %1931 = vmatpush3.bf16.msra.mxu1 %v2144_v9  ;;  %v2171_v48 = vld [vmem:[#allocation10 + $0x70] ss:$8 sps:$4 sm:$0xff]   ;;  %v2174_v1 = vld [vmem:[#allocation11] sm:$0xff]   ;;  %v2175_v2 = vld [vmem:[#allocation11 + $0x8] sm:$0xff]  }
 0x129   : > { %1932 = vmatprep.subr.bf16.mxu1 %v2145_v10  ;;  %v2177_v4 = vld [vmem:[#allocation11 + $0x18] sm:$0xff]   ;;  %v2178_v5 = vld [vmem:[#allocation11 + $0x20] sm:$0xff]   ;;  %v2179_v6 = vld [vmem:[#allocation11 + $0x28] sm:$0xff]  }
 0x12a   : > { %1913 = vmatpush3.bf16.msra.mxu0 %v2135_v3  ;;  %v2176_v3 = vld [vmem:[#allocation11 + $0x10] sm:$0xff]   ;;  %v2182_v9 = vld [vmem:[#allocation13] sm:$0xff]  }
 0x12b   : > { %1914 = vmatprep.subr.bf16.mxu0 %v2136_v7 }
 0x12c   : > { %1933 = vmatpush3.bf16.msra.mxu1 %v2145_v10  ;;  %v2183_v10 = vld [vmem:[#allocation13 + $0x8] sm:$0xff]  }
 0x12d   : > { %1934 = vmatprep.subr.bf16.mxu1 %v2146_v12 }
 0x12e   : > { %1915 = vmatpush3.bf16.msra.mxu0 %v2136_v7  ;;  %v2180_v7 = vld [vmem:[#allocation11 + $0x30] sm:$0xff]  }
 0x12f   : > { %1916 = vmatprep.subr.bf16.mxu0 %v2137_v8 }
 0x130   : > { %1935 = vmatpush3.bf16.msra.mxu1 %v2146_v12  ;;  %v2185_v12 = vld [vmem:[#allocation13 + $0x18] sm:$0xff]  }
 0x131   : > { %1936 = vmatprep.subr.bf16.mxu1 %v2147_v15 }
 0x132   : > { %1917 = vmatpush3.bf16.msra.mxu0 %v2137_v8  ;;  %v2181_v8 = vld [vmem:[#allocation11 + $0x38] sm:$0xff]  }
 0x133   : > { %1918 = vmatprep.subr.bf16.mxu0 %v2138_v11 }
 0x134   : > { %1937 = vmatpush3.bf16.msra.mxu1 %v2147_v15 }
 0x135   : > { %1938 = vmatprep.subr.bf16.mxu1 %v2148_v16 }
 0x136   : > { %1919 = vmatpush3.bf16.msra.mxu0 %v2138_v11  ;;  %v2184_v11 = vld [vmem:[#allocation13 + $0x10] sm:$0xff]  }
 0x137   : > { %1920 = vmatprep.subr.bf16.mxu0 %v2139_v13 }
 0x138   : > { %1939 = vmatpush3.bf16.msra.mxu1 %v2148_v16 }
 0x139   : > { %1940 = vmatprep.subr.bf16.mxu1 %v2149_v17 }
 0x13a   : > { %1921 = vmatpush3.bf16.msra.mxu0 %v2139_v13  ;;  %v2186_v13 = vld [vmem:[#allocation13 + $0x20] sm:$0xff]  }
 0x13b   : > { %1037 = vmatprep.subr.bf16.mxu0 %v2152_v19 }
 0x13c   : > { %1941 = vmatpush3.bf16.msra.mxu1 %v2149_v17  ;;  %v945_v17 = vld [vmem:[%s3224_s23] sm:$0x3]  ;;  %s2583_s23 = smov [#allocation17]  }
 0x13d   : > { %1923 = vmatmul.mubr.bf16.vlgmr.msra.gmra.mrb[0].mxu0 %v2141_v14  ;;  %1946 = vmatprep.subr.bf16.mxu1 %v2174_v1  ;;  %v947_v14 = vlaneseq  ;;  %s2454_s30 = sshll.u32 %s2583_s23, 4  ;;  %s2455_s30 = int_to_ptr.vmem [resolvable:$false] %s2454_s30 }
 0x13e   : > { %1038 = vmatpush1.bf16.msra.mxu0 %v2150_v18  ;;  %1069 = vmatprep.mubr.bf16.mxu0 %v2582_v49 }
 0x13f   : > { %1039 = vmatprep.subr.bf16.mxu0 %v2155_v20  ;;  %v948_v15 = vshrl.u32 %v947_v14, 7 }
 0x141   : > { %v949_v16 = vsub.s32 0, %v948_v15  ;;  %v953_v18 = vsub.s32 1, %v948_v15 }
 0x142   : > { %1040 = vmatpush1.bf16.msra.mxu0 %v2153_v21 }
 0x143   : > { %1041 = vmatprep.subr.bf16.mxu0 %v2158_v22  ;;  %v950_v19 = vrot.slane %v945_v17, %v949_v16  ;;  %v954_v20 = vrot.slane %v945_v17, %v953_v18 }
 0x146   : > { %1042 = vmatpush1.bf16.msra.mxu0 %v2156_v23 }
 0x147   : > { %1043 = vmatprep.subr.bf16.mxu0 %v2161_v24 }
 0x14a   : > { %1044 = vmatpush1.bf16.msra.mxu0 %v2159_v25 }
 0x14b   : > { %1045 = vmatprep.subr.bf16.mxu0 %v2164_v26 }
 0x14e   : > { %1046 = vmatpush1.bf16.msra.mxu0 %v2162_v27 }
 0x14f   : > { %1047 = vmatprep.subr.bf16.mxu0 %v2167_v28 }
 0x152   : > { %1048 = vmatpush1.bf16.msra.mxu0 %v2165_v29 }
 0x153   : > { %1049 = vmatprep.subr.bf16.mxu0 %v2170_v45  ;;  %v1110_v45 = vld [vmem:[%s3012_s13] sm:$0xff] }
 0x156   : > { %1050 = vmatpush1.bf16.msra.mxu0 %v2168_v46 }
 0x157   : > { %1051 = vmatprep.subr.bf16.mxu0 %v2173_v47  ;;  %v1111_v47 = vld [vmem:[%s3012_s13 + $0x8] sm:$0xff] }
 0x15a   : > { %1052 = vmatpush1.bf16.msra.mxu0 %v2171_v48 }
 0x15b   : > { %1966 = vmatprep.subr.bf16.mxu0 %v2182_v9 }
 0x210   : > { %v1924_v30 = vpop.f32.mrb[0].mxu0 }
 0x211   : > { %v778_v32 = vpop.f32.mrb[1].mxu0  ;;  %v787_v34 = vadd.f32 %v1924_v30, %v1775_v31 }
 0x212   : > { %v1925_v33 = vpop.f32.mrb[2].mxu0  ;;  %v779_v37 = vadd.f32 %v1775_v31, %v778_v32 }
 0x213   : > { %v790_v35 = vadd.f32 %v1925_v33, %v1775_v31  ;;  %v781_v36 = vpop.f32.mrb[3].mxu0 }
 0x214   : > { %v782_v38 = vadd.f32 %v1775_v31, %v781_v36 }
 0x215   : > { %v794_v39 = vpack.c.bf16 %v790_v35, %v787_v34 }
 0x216   : > { %v793_v40 = vpack.c.bf16 %v782_v38, %v779_v37 }
 0x217   : > { %v798_v41 = vmul.bf16 1045249613, %v794_v39  ;;  %vm796_vm1 = vcmp.gt.bf16.partialorder %v794_v39, 0 }
 0x218   : > { %vm795_vm0 = vcmp.gt.bf16.partialorder %v793_v40, 0  ;;  %v797_v42 = vmul.bf16 1045249613, %v793_v40 }
 0x219   : > { %v800_v44 = vsel %vm796_vm1, %v794_v39, %v798_v41 }
 0x21a   : > { %v799_v43 = vsel %vm795_vm0, %v793_v40, %v797_v42 }
 0x21b   : > { %1942 = vmatprep.mubr.bf16.mxu1 %v799_v43 }
 0x21c   : > { %1943 = vmatmul.mubr.bf16.vlgmr.msra.gmra.mrb[0].mxu1 %v800_v44 }
 0x21d   : > { %1947 = vmatpush3.bf16.msra.mxu1 %v2174_v1  ;;  %v2189_v1 = vld [vmem:[#allocation13 + $0x38] sm:$0xff]  }
 0x21e   : > { %1948 = vmatprep.subr.bf16.mxu1 %v2175_v2 }
 0x221   : > { %1949 = vmatpush3.bf16.msra.mxu1 %v2175_v2  ;;  %v2190_v2 = vld [vmem:[#allocation14] sm:$0xff]  }
 0x222   : > { %1950 = vmatprep.subr.bf16.mxu1 %v2176_v3 }
 0x225   : > { %1951 = vmatpush3.bf16.msra.mxu1 %v2176_v3  ;;  %v2191_v3 = vld [vmem:[#allocation14 + $0x8] sm:$0xff]  }
 0x226   : > { %1952 = vmatprep.subr.bf16.mxu1 %v2177_v4 }
 0x229   : > { %1953 = vmatpush3.bf16.msra.mxu1 %v2177_v4  ;;  %v2192_v4 = vld [vmem:[#allocation14 + $0x10] sm:$0xff]  }
 0x22a   : > { %1954 = vmatprep.subr.bf16.mxu1 %v2178_v5 }
 0x22d   : > { %1955 = vmatpush3.bf16.msra.mxu1 %v2178_v5  ;;  %v2193_v5 = vld [vmem:[#allocation14 + $0x18] sm:$0xff]  }
 0x22e   : > { %1956 = vmatprep.subr.bf16.mxu1 %v2179_v6 }
 0x231   : > { %1957 = vmatpush3.bf16.msra.mxu1 %v2179_v6  ;;  %v2194_v6 = vld [vmem:[#allocation14 + $0x20] sm:$0xff]  }
 0x232   : > { %1958 = vmatprep.subr.bf16.mxu1 %v2180_v7 }
 0x235   : > { %1959 = vmatpush3.bf16.msra.mxu1 %v2180_v7 }
 0x236   : > { %1960 = vmatprep.subr.bf16.mxu1 %v2181_v8 }
 0x239   : > { %1961 = vmatpush3.bf16.msra.mxu1 %v2181_v8  ;;  %v1811_v8 = vld [vmem:[%s3225_s5] ss:$0 sm:$0xff] }
 0x23a   : > { %1986 = vmatprep.subr.bf16.mxu1 %v2190_v2 }
 0x2ef   : > { %v1944_v50 = vpop.f32.mrb[0].mxu1 }
 0x2f0   : > { %v906_v52 = vpop.f32.mrb[1].mxu1  ;;  %v915_v54 = vadd.f32 %v1944_v50, %v1786_v51 }
 0x2f1   : > { %v1945_v53 = vpop.f32.mrb[2].mxu1  ;;  %v907_v57 = vadd.f32 %v1786_v51, %v906_v52 }
 0x2f2   : > { %v918_v55 = vadd.f32 %v1945_v53, %v1786_v51  ;;  %v909_v56 = vpop.f32.mrb[3].mxu1  ;;  %v1112_v53 = vld [vmem:[%s3012_s13 + $0x10] sm:$0xff] }
 0x2f3   : > { %v910_v58 = vadd.f32 %v1786_v51, %v909_v56  ;;  %v1113_v56 = vld [vmem:[%s3012_s13 + $0x18] sm:$0xff]  ;;  %s1564_s13 = sshll.u32 %s3046_s10, 4  ;;  %s3067_s13 = int_to_ptr.vmem [resolvable:$true] %s1564_s13 }
 0x2f4   : > { %v922_v59 = vpack.c.bf16 %v918_v55, %v915_v54  ;;  %s2450_s16 = scalar_lea.vmem %s3067_s13, 1024  ;;  %p2457_p9 = scmp.lt.s32.totalorder %s3067_s13, %s2455_s30 }
 0x2f5   : > { %v921_v60 = vpack.c.bf16 %v910_v58, %v907_v57  ;;  %p2451_p4 = scmp.ne.s32.totalorder %s3067_s13, %s2450_s16 }
 0x2f6   : > { %v926_v63 = vmul.bf16 1045249613, %v922_v59  ;;  %vm924_vm3 = vcmp.gt.bf16.partialorder %v922_v59, 0 }
 0x2f7   : > { %v925_v61 = vmul.bf16 1045249613, %v921_v60  ;;  %vm923_vm2 = vcmp.gt.bf16.partialorder %v921_v60, 0  ;;  %p2452_p5 = pnand %p2451_p4, %p3228_p10 }
 0x2f8   : > { %v928_v0 = vsel %vm924_vm3, %v922_v59, %v926_v63  ;;  %v2187_v63 = vld [vmem:[#allocation13 + $0x28] sm:$0xff]  }
 0x2f9   : > { %v927_v62 = vsel %vm923_vm2, %v921_v60, %v925_v61  ;;  %p2453_p7 = pneg %p2452_p5 }
 0x2fa   : > { %1070 = vmatmul.mubr.bf16.vlgmr.msra.gmra.mrb[4].mxu0 %v927_v62 }
 0x2fb   : > { %1079 = vmatprep.mubr.bf16.mxu0 %v2582_v49  ;;  %1967 = vmatpush3.bf16.msra.mxu0 %v2182_v9 }
 0x2fc   : > { %1968 = vmatprep.subr.bf16.mxu0 %v2183_v10 }
 0x2ff   : > { %1969 = vmatpush3.bf16.msra.mxu0 %v2183_v10 }
 0x300   : > { %1970 = vmatprep.subr.bf16.mxu0 %v2184_v11 }
 0x302   : > { %1080 = vmatmul.mubr.bf16.gmra.mrb[8].mxu0 %v928_v0  ;;  %v2188_v0 = vld [vmem:[#allocation13 + $0x30] sm:$0xff]  }
 0x303   : > { %1971 = vmatpush3.bf16.msra.mxu0 %v2184_v11 }
 0x304   : > { %1972 = vmatprep.subr.bf16.mxu0 %v2185_v12 }
 0x307   : > { %1973 = vmatpush3.bf16.msra.mxu0 %v2185_v12 }
 0x308   : > { %1974 = vmatprep.subr.bf16.mxu0 %v2186_v13 }
 0x30b   : > { %1975 = vmatpush3.bf16.msra.mxu0 %v2186_v13 }
 0x30c   : > { %1976 = vmatprep.subr.bf16.mxu0 %v2187_v63 }
 0x30f   : > { %1977 = vmatpush3.bf16.msra.mxu0 %v2187_v63 }
 0x310   : > { %1978 = vmatprep.subr.bf16.mxu0 %v2188_v0 }
 0x313   : > { %1979 = vmatpush3.bf16.msra.mxu0 %v2188_v0 }
 0x314   : > { %1980 = vmatprep.subr.bf16.mxu0 %v2189_v1 }
 0x317   : > { %1981 = vmatpush3.bf16.msra.mxu0 %v2189_v1 }
 0x3cd   : > { %v1071_v21 = vpop.f32.mrb[4].mxu0 }
 0x3ce   : > { %v1072_v22 = vadd.f32 %v1071_v21, %v950_v19  ;;  %v1073_v23 = vpop.f32.mrb[5].mxu0 }
 0x3cf   : > { %v1074_v24 = vadd.f32 %v1073_v23, %v954_v20  ;;  %v1075_v25 = vpop.f32.mrb[6].mxu0  ;;  %v2196_v23 = vld [vmem:[#allocation14 + $0x30] sm:$0xff]  }
 0x3d0   : > { %1090 = vst [vmem:[%s3046_s10] sm:$0xff] %v1072_v22  ;;  %v1076_v26 = vadd.f32 %v1075_v25, %v950_v19  ;;  %v1077_v27 = vpop.f32.mrb[7].mxu0 }
 0x3d1   : > { %1091 = vst [vmem:[%s3046_s10 + $0x8] sm:$0xff] %v1074_v24  ;;  %v1098_v28 = vmul.f32 0.5, %v1074_v24  ;;  %v1078_v29 = vadd.f32 %v1077_v27, %v954_v20  ;;  %v2197_v24 = vld [vmem:[#allocation14 + $0x38] sm:$0xff]  }
 0x3d2   : > { %1092 = vst [vmem:[%s3046_s10 + $0x10] sm:$0xff] %v1076_v26 }
 0x3d3   : > { %v1102_v30 = vmul.f32 1.442695, %v1098_v28  ;;  %1093 = vst [vmem:[%s3046_s10 + $0x18] sm:$0xff] %v1078_v29  ;;  %v1099_v31 = vmul.f32 0.5, %v1078_v29 }
 0x3d5   : > { %2198 = vpow2.f32 %v1102_v30  ;;  %v1104_v32 = vmul.f32 1.442695, %v1099_v31  ;;  %v1081_v33 = vpop.f32.mrb[8].mxu0 }
 0x3d6   : > { %v1082_v34 = vadd.f32 %v1081_v33, %v950_v19  ;;  %v1083_v35 = vpop.f32.mrb[9].mxu0 }
 0x3d7   : > { %2200 = vpow2.f32 %v1104_v32  ;;  %v1084_v36 = vadd.f32 %v1083_v35, %v954_v20  ;;  %v1085_v37 = vpop.f32.mrb[10].mxu0 }
 0x3d8   : > { %1094 = vst [vmem:[%s3046_s10 + $0x20] sm:$0xff] %v1082_v34  ;;  %v1086_v38 = vadd.f32 %v1085_v37, %v950_v19  ;;  %v1087_v39 = vpop.f32.mrb[11].mxu0 }
 0x3d9   : > { %1095 = vst [vmem:[%s3046_s10 + $0x28] sm:$0xff] %v1084_v36  ;;  %v1100_v40 = vmul.f32 0.5, %v1084_v36  ;;  %v1088_v41 = vadd.f32 %v1087_v39, %v954_v20 }
 0x3da   : > { %1096 = vst [vmem:[%s3046_s10 + $0x30] sm:$0xff] %v1086_v38 }
 0x3db   : > { %v1106_v42 = vmul.f32 1.442695, %v1100_v40  ;;  %1097 = vst [vmem:[%s3046_s10 + $0x38] sm:$0xff] %v1088_v41  ;;  %v1101_v43 = vmul.f32 0.5, %v1088_v41  ;;  %s2456_s10 = scalar_lea.vmem %s2455_s30, 2048 }
 0x3dc   : > { %p2458_p8 = scmp.lt.s32.totalorder %s2456_s10, %s2450_s16 }
 0x3dd   : > { %2202 = vpow2.f32 %v1106_v42  ;;  %v1108_v44 = vmul.f32 1.442695, %v1101_v43 }
 0x3de   : > { %p2459_p11 = por %p2458_p8, %p2457_p9 }
 0x3df   : > { %v2199_v46 = vpop.eup %2198  ;;  %2204 = vpow2.f32 %v1108_v44 }
 0x3e0   : > { %v1114_v48 = vmul.f32 %v2199_v46, %v1110_v45  ;;  %p2460_p3 = pnand %p2459_p11, %p2453_p7 }
 0x3e1   : > { %v2201_v49 = vpop.eup %2200 }
 0x3e2   : > { %v1115_v50 = vmul.f32 %v2201_v49, %v1111_v47  ;;  %v1118_v51 = vadd.f32 %v1114_v48, %v1072_v22  ;;  %v2195_v22 = vld [vmem:[#allocation14 + $0x28] sm:$0xff]  }
 0x3e4   : > { %v1119_v52 = vadd.f32 %v1115_v50, %v1076_v26  ;;  %v1820_v26 = vld [vmem:[%s3226_s25] ss:$0 sm:$0xff] }
 0x3e6   : > { %v1122_v54 = vpack.c.bf16 %v1119_v52, %v1118_v51 }
 0x3e7   : > { %v2203_v55 = vpop.eup %2202 }
 0x3e8   : > { %1962 = vmatprep.mubr.bf16.mxu1 %v1122_v54  ;;  %v1116_v57 = vmul.f32 %v2203_v55, %v1112_v53 }
 0x3e9   : > { %v2205_v58 = vpop.eup %2204 }
 0x3ea   : > { %v1117_v59 = vmul.f32 %v2205_v58, %v1113_v56  ;;  %v1120_v60 = vadd.f32 %v1116_v57, %v1082_v34 }
 0x3ec   : > { %v1121_v61 = vadd.f32 %v1117_v59, %v1086_v38 }
 0x3ee   : > { %v1123_v62 = vpack.c.bf16 %v1121_v61, %v1120_v60 }
 0x3f0   : > { %1963 = vmatmul.mubr.bf16.vlgmr.msra.gmra.mrb[4].mxu1 %v1123_v62 }
 0x3f1   : > { %1987 = vmatpush3.bf16.msra.mxu1 %v2190_v2 }
 0x3f2   : > { %1988 = vmatprep.subr.bf16.mxu1 %v2191_v3 }
 0x3f5   : > { %1989 = vmatpush3.bf16.msra.mxu1 %v2191_v3 }
 0x3f6   : > { %1990 = vmatprep.subr.bf16.mxu1 %v2192_v4 }
 0x3f9   : > { %1991 = vmatpush3.bf16.msra.mxu1 %v2192_v4 }
 0x3fa   : > { %1992 = vmatprep.subr.bf16.mxu1 %v2193_v5 }
 0x3fd   : > { %1993 = vmatpush3.bf16.msra.mxu1 %v2193_v5 }
 0x3fe   : > { %1994 = vmatprep.subr.bf16.mxu1 %v2194_v6 }
 0x401   : > { %1995 = vmatpush3.bf16.msra.mxu1 %v2194_v6 }
 0x402   : > { %1996 = vmatprep.subr.bf16.mxu1 %v2195_v22 }
 0x405   : > { %1997 = vmatpush3.bf16.msra.mxu1 %v2195_v22 }
 0x406   : > { %1998 = vmatprep.subr.bf16.mxu1 %v2196_v23 }
 0x409   : > { %1999 = vmatpush3.bf16.msra.mxu1 %v2196_v23 }
 0x40a   : > { %2000 = vmatprep.subr.bf16.mxu1 %v2197_v24 }
 0x40d   : > { %2001 = vmatpush3.bf16.msra.mxu1 %v2197_v24 }
 0x4c3   : > { %v1964_v7 = vpop.f32.mrb[4].mxu1 }
 0x4c4   : > { %v1229_v9 = vpop.f32.mrb[5].mxu1  ;;  %v1238_v11 = vadd.f32 %v1964_v7, %v1811_v8 }
 0x4c5   : > { %v1965_v10 = vpop.f32.mrb[6].mxu1  ;;  %v1230_v14 = vadd.f32 %v1811_v8, %v1229_v9 }
 0x4c6   : > { %v1241_v12 = vadd.f32 %v1965_v10, %v1811_v8  ;;  %v1232_v13 = vpop.f32.mrb[7].mxu1 }
 0x4c7   : > { %v1233_v15 = vadd.f32 %v1811_v8, %v1232_v13 }
 0x4c8   : > { %v1245_v16 = vpack.c.bf16 %v1241_v12, %v1238_v11 }
 0x4c9   : > { %v1244_v17 = vpack.c.bf16 %v1233_v15, %v1230_v14 }
 0x4ca   : > { %v1249_v18 = vmul.bf16 1045249613, %v1245_v16  ;;  %vm1247_vm4 = vcmp.gt.bf16.partialorder %v1245_v16, 0 }
 0x4cb   : > { %vm1246_vm5 = vcmp.gt.bf16.partialorder %v1244_v17, 0  ;;  %v1248_v19 = vmul.bf16 1045249613, %v1244_v17 }
 0x4cc   : > { %v1251_v21 = vsel %vm1247_vm4, %v1245_v16, %v1249_v18 }
 0x4cd   : > { %v1250_v20 = vsel %vm1246_vm5, %v1244_v17, %v1248_v19 }
 0x4ce   : > { %1982 = vmatprep.mubr.bf16.mxu0 %v1250_v20 }
 0x4cf   : > { %1983 = vmatmul.mubr.bf16.vlgmr.msra.gmra.mrb[12].mxu0 %v1251_v21 }
 0x5a2   : > { %v1984_v25 = vpop.f32.mrb[12].mxu0 }
 0x5a3   : > { %v1357_v27 = vpop.f32.mrb[13].mxu0  ;;  %v1366_v29 = vadd.f32 %v1984_v25, %v1820_v26 }
 0x5a4   : > { %v1985_v28 = vpop.f32.mrb[14].mxu0  ;;  %v1358_v32 = vadd.f32 %v1820_v26, %v1357_v27 }
 0x5a5   : > { %v1369_v30 = vadd.f32 %v1985_v28, %v1820_v26  ;;  %v1360_v31 = vpop.f32.mrb[15].mxu0 }
 0x5a6   : > { %v1361_v33 = vadd.f32 %v1820_v26, %v1360_v31 }
 0x5a7   : > { %v1373_v34 = vpack.c.bf16 %v1369_v30, %v1366_v29 }
 0x5a8   : > { %v1372_v35 = vpack.c.bf16 %v1361_v33, %v1358_v32 }
 0x5a9   : > { %v1377_v36 = vmul.bf16 1045249613, %v1373_v34  ;;  %vm1375_vm7 = vcmp.gt.bf16.partialorder %v1373_v34, 0 }
 0x5aa   : > { %vm1374_vm6 = vcmp.gt.bf16.partialorder %v1372_v35, 0  ;;  %v1376_v37 = vmul.bf16 1045249613, %v1372_v35 }
 0x5ab   : > { %v1379_v39 = vsel %vm1375_vm7, %v1373_v34, %v1377_v36 }
 0x5ac   : > { %v1378_v38 = vsel %vm1374_vm6, %v1372_v35, %v1376_v37 }
 0x5ad   : > { %2002 = vmatprep.mubr.bf16.mxu1 %v1378_v38 }
 0x5ae   : > { %2003 = vmatmul.mubr.bf16.vlgmr.msra.gmra.mrb[8].mxu1 %v1379_v39 }
 0x5af   : > { %2463 = shalt.err (!%p2460_p3)
}
 0x5b0   : > { %s2464_s4 = scalar_lea.hbm %s3073_s28, 1024  ;;  %s2468_s14 = scalar_lea.hbm %s3227_s7, 2048 }
 0x5b1   : > { %p2465_p12 = scmp.ne.s32.totalorder %s3073_s28, %s2464_s4  ;;  %p2469_p0 = scmp.lt.u32.totalorder %s3073_s28, %s3227_s7 }
 0x5b2   : > { %p2470_p6 = scmp.lt.u32.totalorder %s2468_s14, %s2464_s4  ;;  %p2472_p4 = scmp.lt.u32.totalorder %s2464_s4, %s3073_s28 }
 0x5b3   : > { %p2466_p1 = pnand %p2465_p12, %p3228_p10 }
 0x5b4   : > { %p2471_p2 = por %p2470_p6, %p2469_p0 }
 0x5b5   : > { %p2467_p13 = pneg %p2466_p1 }
 0x5b6   : > { %p2473_p5 = por %p2472_p4, %p2471_p2 }
 0x5b8   : > { %p2474_p7 = pnand %p2473_p5, %p2467_p13 }
 0x5ba   : > { %2477 = shalt.err (!%p2474_p7)
}
 0x5bb   : > { %s2584_s29 = smov 256   ;;  %s2585_s22 = smov 16  }
 0x5bc   : > { %2035 = dma.vmem_to_hbm [thread:$0]  (%p3228_p10), %s3067_s13, 1024, %s3073_s28, %s1534_s6, %s2584_s29, %s2584_s29, %s2585_s22  }
 0x5bd   : > { %s3229_s23 = sld [smem:[#allocation37_spill]]  ;;  %s1853_s13 = sshll.u32 %s2690_s24, 9 }
 0x5be   : > { %s643_s28 = scalar_lea.vmem [#allocation16], %s1766_s2  ;;  %s3230_s4 = sld [smem:[#allocation38_spill]] }
 0x5bf   : > { %s1547_s6 = sshll.u32 %s643_s28, 4  ;;  %s1529_s24 = scalar_lea.sflag [#allocation4], %s2998_s17  ;;  %s3110_s6 = int_to_ptr.vmem [resolvable:$true] %s1547_s6 }
 0x5c0   : > { %s2478_s2 = scalar_lea.vmem %s3110_s6, 512  ;;  %s2586_s5 = smov [#allocation16]  }
 0x5c1   : > { %p2479_p9 = scmp.ne.s32.totalorder %s3110_s6, %s2478_s2  ;;  %s2482_s14 = sshll.u32 %s2586_s5, 4  ;;  %s2483_s14 = int_to_ptr.vmem [resolvable:$false] %s2482_s14 }
 0x5c2   : > { %s2484_s0 = scalar_lea.vmem %s2483_s14, 1024  ;;  %p2485_p3 = scmp.lt.s32.totalorder %s3110_s6, %s2483_s14 }
 0x5c3   : > { %v1829_v40 = vld [vmem:[%s3229_s23] ss:$0 sm:$0xff]  ;;  %p2480_p8 = pnand %p2479_p9, %p3228_p10  ;;  %p2486_p12 = scmp.lt.s32.totalorder %s2484_s0, %s2478_s2 }
 0x5c4   : > { %s3108_s8 = scalar_lea.hbm %s3230_s4, %s1853_s13 }
 0x5c5   : > { %p2481_p11 = pneg %p2480_p8  ;;  %p2487_p1 = por %p2486_p12, %p2485_p3 }
 0x5c7   : > { %p2488_p13 = pnand %p2487_p1, %p2481_p11 }
 0x681   : > { %v2004_v41 = vpop.f32.mrb[8].mxu1 }
 0x682   : > { %v1494_v42 = vadd.f32 %v2004_v41, %v1829_v40  ;;  %v1485_v43 = vpop.f32.mrb[9].mxu1 }
 0x683   : > { %v1486_v44 = vadd.f32 %v1829_v40, %v1485_v43  ;;  %v2005_v45 = vpop.f32.mrb[10].mxu1 }
 0x684   : > { %v1840_v46 = vmul.f32 -1.442695, %v1494_v42  ;;  %v1497_v47 = vadd.f32 %v2005_v45, %v1829_v40  ;;  %v1488_v48 = vpop.f32.mrb[11].mxu1 }
 0x685   : > { %v1838_v49 = vmul.f32 -1.442695, %v1486_v44  ;;  %v1489_v50 = vadd.f32 %v1829_v40, %v1488_v48 }
 0x686   : > { %2206 = vpow2.f32 %v1840_v46  ;;  %v1841_v51 = vmul.f32 -1.442695, %v1497_v47 }
 0x687   : > { %2208 = vpow2.f32 %v1838_v49  ;;  %v1839_v52 = vmul.f32 -1.442695, %v1489_v50 }
 0x688   : > { %2210 = vpow2.f32 %v1841_v51 }
 0x689   : > { %2212 = vpow2.f32 %v1839_v52 }
 0x690   : > { %v2207_v53 = vpop.eup %2206 }
 0x691   : > { %v2209_v54 = vpop.eup %2208  ;;  %v1514_v55 = vadd.f32 1.0, %v2207_v53 }
 0x692   : > { %v2211_v56 = vpop.eup %2210  ;;  %v1512_v57 = vadd.f32 1.0, %v2209_v54 }
 0x693   : > { %v2213_v58 = vpop.eup %2212  ;;  %2214 = vrcp.f32 %v1514_v55  ;;  %v1515_v59 = vadd.f32 1.0, %v2211_v56 }
 0x694   : > { %2216 = vrcp.f32 %v1512_v57  ;;  %v1513_v60 = vadd.f32 1.0, %v2213_v58 }
 0x695   : > { %2218 = vrcp.f32 %v1515_v59 }
 0x696   : > { %2220 = vrcp.f32 %v1513_v60 }
 0x69d   : > { %v2215_v61 = vpop.eup %2214 }
 0x69e   : > { %v2217_v62 = vpop.eup %2216  ;;  %1526 = vst [vmem:[%s643_s28 + $0x10] sm:$0xff] %v2215_v61 }
 0x69f   : > { %v2219_v63 = vpop.eup %2218  ;;  %1524 = vst [vmem:[%s643_s28] sm:$0xff] %v2217_v62 }
 0x6a0   : > { %v2221_v0 = vpop.eup %2220  ;;  %1527 = vst [vmem:[%s643_s28 + $0x18] sm:$0xff] %v2219_v63 }
 0x6a1   : > { %1525 = vst [vmem:[%s643_s28 + $0x8] sm:$0xff] %v2221_v0 }
 0x6a2   : > { %2491 = shalt.err (!%p2488_p13)
}
 0x6a3   : > { %s2492_s25 = scalar_lea.hbm %s3108_s8, 512  ;;  %s2496_s15 = scalar_lea.hbm %s3230_s4, 1024 }
 0x6a4   : > { %p2493_p0 = scmp.ne.s32.totalorder %s3108_s8, %s2492_s25  ;;  %p2497_p4 = scmp.lt.u32.totalorder %s3108_s8, %s3230_s4 }
 0x6a5   : > { %p2498_p5 = scmp.lt.u32.totalorder %s2496_s15, %s2492_s25  ;;  %p2500_p9 = scmp.lt.u32.totalorder %s2492_s25, %s3108_s8 }
 0x6a6   : > { %p2494_p6 = pnand %p2493_p0, %p3228_p10 }
 0x6a7   : > { %p2499_p7 = por %p2498_p5, %p2497_p4 }
 0x6a8   : > { %p2495_p2 = pneg %p2494_p6 }
 0x6a9   : > { %p2501_p8 = por %p2500_p9, %p2499_p7 }
 0x6ab   : > { %p2502_p11 = pnand %p2501_p8, %p2495_p2 }
 0x6ad   : > { %2505 = shalt.err (!%p2502_p11)
}
 0x6ae   : > { %s2587_s13 = smov 128   ;;  %s2588_s28 = smov 8  }
 0x6af   : > { %2034 = dma.vmem_to_hbm [thread:$0]  (%p3228_p10), %s3110_s6, 512, %s3108_s8, %s1529_s24, %s2587_s13, %s2587_s13, %s2588_s28  }
 0x6b0 PF: > { %s1579_s30 = sand.u32 1, %s2556_s18   ;;  %p3231_p3 = scmp.ne.s32.totalorder %s3208_s11, 0 }
 0x6b1   : > { %p3232_p12 = scmp.ge.s32.totalorder %s2568_s21, 2  ;;  %s1580_s10 = scalar_lea.sflag [#allocation4], %s1579_s30 }
 0x6b3   : > { %p2065_p1 = pnand %p3232_p12, %p3231_p3 }
 0x6b5   : > { %2547 = dma.done.wait (!%p2065_p1), %s1580_s10, 512  }
 0x6b6   : > { %2549 = vsyncadd (!%p2065_p1), %s1580_s10, 4294966784  ;;  %s1589_s2 = scalar_lea.sflag [#allocation18], %s1579_s30 }
 0x6b7   : > { %2551 = dma.done.wait (!%p2065_p1), %s1589_s2, 1024  }
 0x6b8   : > { %2553 = vsyncadd (!%p2065_p1), %s1589_s2, 4294966272  ;;  %p38_p10 = scmp.ge.s32.totalorder %s2870_s26, 4   ;;  %s3233_s18 = smov %s2560_s19 }
 0x6b9   : > { %s3234_s19 = smov %s2564_s20  ;;  %s3235_s20 = smov %s2881_s27 }
 0x6ba   : > { %s3236_s21 = smov %s2870_s26  ;;  %40 = sbr.rel (!%p38_p10) target bundleno = 26 (0x1a), region = 175 }
 0x6c1   :  { %1594 = vsyncpa [#allocation3], 1 }
 0x6c2   :  { %1596 = vsyncpa [#allocation3 + $0x1], 1 }
 0x6c3   :  { %1597 = vsyncpa [#allocation6], 1 }
 0x6c4   :  { %1599 = vsyncpa [#allocation6 + $0x1], 1 }
 0x6c5   :  { %1600 = vsyncpa [#allocation9], 1 }
 0x6c6   :  { %1601 = vsyncpa [#allocation12], 1 }
 0x6c7   :  { %1602 = vsyncpa [#allocation15], 1 }
 0x6c8   :  { %1603 = vsyncpa [#allocation4], 1 }
 0x6c9   :  { %1605 = vsyncpa [#allocation4 + $0x1], 1 }
 0x6ca   :  { %1606 = vsyncpa [#allocation18], 1 }
 0x6cb   :  { %1608 = vsyncpa [#allocation18 + $0x1], 1 }

</bundles_post_ra>
